<compile_context>
chip_gen: v6e
topology: v6e:2x2x1
jax: 0.10.0
libtpu: 0.0.40
codegen_flags: <defaults>
</compile_context>

<pallas_src>
import jax
import jax.numpy as jnp
from jax.experimental import pallas as pl
from jax.experimental.pallas import tpu as pltpu


def _lstm_decoder_kernel(x_ref, h0_ref, c0_ref, wih_ref, whh_ref, b_ref,
                         wfc_ref, bfc_ref,
                         y_ref, hout_ref, cout_ref,
                         gx_ref, hs_ref):
    B, H = h0_ref.shape
    SB = x_ref.shape[0]
    S = SB // B
    O = y_ref.shape[-1]

    # ---- Hoisted input projection: ONE (S*B, E) @ (E, 4H) MXU pass (+bias),
    # written to a single lane-dense (S*B, 4H) scratch. ----
    gx_ref[...] = (jnp.dot(x_ref[...], wih_ref[...],
                           preferred_element_type=jnp.float32)
                   + b_ref[...])                                # (S*B, 4H)

    # Fused recurrent weight loaded once, outside the loop.
    w_hh = whh_ref[...]                                         # (H, 4H)

    h = h0_ref[...].astype(jnp.float32)                         # (B, H)
    c = c0_ref[...].astype(jnp.float32)                         # (B, H)

    # ---- Recurrence (serial critical path): one fused (B,H)@(H,4H) matmul
    # per timestep, then static per-gate slices of the (B, 4H) pre-activations.
    # Fully unrolled at trace time (S is small & static). ----
    for t in range(S):
        gates = (gx_ref[pl.ds(t * B, B), :]
                 + jnp.dot(h, w_hh, preferred_element_type=jnp.float32))
        i_g = jax.nn.sigmoid(gates[:, 0 * H:1 * H])
        f_g = jax.nn.sigmoid(gates[:, 1 * H:2 * H])
        g_g = jnp.tanh(gates[:, 2 * H:3 * H])
        o_g = jax.nn.sigmoid(gates[:, 3 * H:4 * H])

        c = f_g * c + i_g * g_g
        h = o_g * jnp.tanh(c)
        hs_ref[:, t, :] = h                                     # (B, H) slab

    hout_ref[...] = h.astype(hout_ref.dtype)
    cout_ref[...] = c.astype(cout_ref.dtype)

    # ---- Hoisted output projection: one (B*S, H) @ (H, O) matmul; hs is
    # batch-major so the reshape to (B, S, O) is layout-free. ----
    hs = hs_ref[...].reshape(B * S, H)
    y = (jnp.dot(hs, wfc_ref[...], preferred_element_type=jnp.float32)
         + bfc_ref[...])                                        # (B*S, O)
    y_ref[...] = y.reshape(B, S, O).astype(y_ref.dtype)


def seq2seq_decoder_forward(token_ids, h0, c0, params):
    """token_ids: (B, S) int32, h0/c0: (1, B, H). Returns (y, h, c)."""
    B, S = token_ids.shape
    H = h0.shape[-1]
    E = params["embedding"].shape[-1]
    O = params["wfc"].shape[-1]

    # Glue: embedding gather directly into a time-major-flattened (S*B, E)
    # slab (row index = t*B + b), so each timestep inside the kernel is the
    # contiguous row block [t*B, t*B + B).
    x_flat = params["embedding"][token_ids.T.reshape(-1)]        # (S*B, E)

    # Explicit VMEM budget: inputs + outputs + scratches, f32, with headroom.
    vmem_words = (
        S * B * E + 2 * B * H                                    # x, h0, c0
        + E * 4 * H + H * 4 * H + 4 * H + H * O + O              # weights/biases
        + B * S * O + 2 * B * H                                  # outputs
        + S * B * 4 * H + B * S * H                              # gx, hs scratches
    )
    vmem_limit = min(int(vmem_words * 4 * 2) + (4 << 20), 120 << 20)

    y, h_T, c_T = pl.pallas_call(
        _lstm_decoder_kernel,
        out_shape=(
            jax.ShapeDtypeStruct((B, S, O), jnp.float32),
            jax.ShapeDtypeStruct((B, H), jnp.float32),
            jax.ShapeDtypeStruct((B, H), jnp.float32),
        ),
        grid_spec=pltpu.PrefetchScalarGridSpec(
            num_scalar_prefetch=0,
            grid=(1,),                                           # single invocation
            in_specs=[
                pl.BlockSpec((S * B, E), lambda i: (0, 0)),      # embedded seq (time-major rows)
                pl.BlockSpec((B, H), lambda i: (0, 0)),          # h0
                pl.BlockSpec((B, H), lambda i: (0, 0)),          # c0
                pl.BlockSpec((E, 4 * H), lambda i: (0, 0)),      # W_ih^T (fused gates)
                pl.BlockSpec((H, 4 * H), lambda i: (0, 0)),      # W_hh^T (fused gates)
                pl.BlockSpec((1, 4 * H), lambda i: (0, 0)),      # b_ih + b_hh
                pl.BlockSpec((H, O), lambda i: (0, 0)),          # W_fc^T
                pl.BlockSpec((1, O), lambda i: (0, 0)),          # b_fc
            ],
            out_specs=[
                pl.BlockSpec((B, S, O), lambda i: (0, 0, 0)),    # y (batch-first)
                pl.BlockSpec((B, H), lambda i: (0, 0)),          # final h
                pl.BlockSpec((B, H), lambda i: (0, 0)),          # final c
            ],
            scratch_shapes=[
                pltpu.VMEM((S * B, 4 * H), jnp.float32),         # fused gate pre-acts (x path)
                pltpu.VMEM((B, S, H), jnp.float32),              # hidden states
            ],
        ),
        compiler_params=pltpu.CompilerParams(
            dimension_semantics=("arbitrary",),
            vmem_limit_bytes=vmem_limit),
    )(x_flat, h0[0], c0[0], params["wih_t"], params["whh_t"], params["b"],
      params["wfc"], params["bfc"])

    return y, h_T[None], c_T[None]


def _reference_forward(token_ids, h0, c0, params):
    """Pure-JAX reference (lax.scan) mirroring nn.LSTM + Linear semantics."""
    H = h0.shape[-1]
    emb = params["embedding"][token_ids]                 # (B, S, E)

    def step(carry, x_t):
        h, c = carry
        gates = x_t @ params["wih_t"] + h @ params["whh_t"] + params["b"][0]
        i_g = jax.nn.sigmoid(gates[:, :H])
        f_g = jax.nn.sigmoid(gates[:, H:2 * H])
        g_g = jnp.tanh(gates[:, 2 * H:3 * H])
        o_g = jax.nn.sigmoid(gates[:, 3 * H:])
        c = f_g * c + i_g * g_g
        h = o_g * jnp.tanh(c)
        y = h @ params["wfc"] + params["bfc"][0]
        return (h, c), y

    (h_T, c_T), ys = jax.lax.scan(step, (h0[0], c0[0]),
                                  jnp.transpose(emb, (1, 0, 2)))
    return jnp.transpose(ys, (1, 0, 2)), h_T[None], c_T[None]


def init_params(key, vocab_size, embed_dim, hidden_dim, output_size,
                padding_idx=0):
    ks = jax.random.split(key, 7)
    scale = 1.0 / jnp.sqrt(hidden_dim)
    emb = jax.random.normal(ks[0], (vocab_size, embed_dim), jnp.float32) * 0.1
    emb = emb.at[padding_idx].set(0.0)                   # nn.Embedding padding_idx row
    w_ih = jax.random.uniform(ks[1], (4 * hidden_dim, embed_dim),
                              jnp.float32, -scale, scale)
    w_hh = jax.random.uniform(ks[2], (4 * hidden_dim, hidden_dim),
                              jnp.float32, -scale, scale)
    b_ih = jax.random.uniform(ks[3], (4 * hidden_dim,), jnp.float32, -scale, scale)
    b_hh = jax.random.uniform(ks[4], (4 * hidden_dim,), jnp.float32, -scale, scale)
    w_fc = jax.random.uniform(ks[5], (output_size, hidden_dim),
                              jnp.float32, -scale, scale)
    b_fc = jax.random.uniform(ks[6], (output_size,), jnp.float32, -scale, scale)
    return {
        "embedding": emb,
        "wih_t": w_ih.T,                                 # (E, 4H), gate order i,f,g,o
        "whh_t": w_hh.T,                                 # (H, 4H)
        "b": (b_ih + b_hh)[None, :],                     # (1, 4H)
        "wfc": w_fc.T,                                   # (H, O)
        "bfc": b_fc[None, :],                            # (1, O)
    }


if __name__ == "__main__":
    # Small shapes consistent with the module's forward.
    B, S = 2, 8
    VOCAB, E, H, O = 32, 16, 32, 32

    key = jax.random.PRNGKey(0)
    k_p, k_x, k_h, k_c = jax.random.split(key, 4)

    params = init_params(k_p, VOCAB, E, H, O)
    token_ids = jax.random.randint(k_x, (B, S), 0, VOCAB, dtype=jnp.int32)
    h0 = jax.random.normal(k_h, (1, B, H), jnp.float32)   # (num_layers*D, B, H)
    c0 = jax.random.normal(k_c, (1, B, H), jnp.float32)

    y, h_T, c_T = seq2seq_decoder_forward(token_ids, h0, c0, params)
    jax.block_until_ready((y, h_T, c_T))

    y_ref, h_ref, c_ref = _reference_forward(token_ids, h0, c0, params)
    assert jnp.allclose(y, y_ref, atol=1e-4, rtol=1e-4)
    assert jnp.allclose(h_T, h_ref, atol=1e-4, rtol=1e-4)
    assert jnp.allclose(c_T, c_ref, atol=1e-4, rtol=1e-4)

    print("KERNEL_OK")
</pallas_src>

<mosaic_0001>
module attributes {stable_mosaic.version = 11 : i64} {
  func.func @_lstm_decoder_kernel(%arg0: i32, %arg1: memref<16x16xf32, #tpu.memory_space<vmem>>, %arg2: memref<2x32xf32, #tpu.memory_space<vmem>>, %arg3: memref<2x32xf32, #tpu.memory_space<vmem>>, %arg4: memref<16x128xf32, #tpu.memory_space<vmem>>, %arg5: memref<32x128xf32, #tpu.memory_space<vmem>>, %arg6: memref<1x128xf32, #tpu.memory_space<vmem>>, %arg7: memref<32x32xf32, #tpu.memory_space<vmem>>, %arg8: memref<1x32xf32, #tpu.memory_space<vmem>>, %arg9: memref<2x8x32xf32, #tpu.memory_space<vmem>>, %arg10: memref<2x32xf32, #tpu.memory_space<vmem>>, %arg11: memref<2x32xf32, #tpu.memory_space<vmem>>, %arg12: memref<16x128xf32, #tpu.memory_space<vmem>>, %arg13: memref<2x8x32xf32, #tpu.memory_space<vmem>>) attributes {dimension_semantics = [#tpu.dimension_semantics<arbitrary>], iteration_bounds = array<i64: 1>, scalar_prefetch = 0 : i64, scratch_operands = 2 : i64, tpu.core_type = #tpu.core_type<tc>, window_params = [{pipeline_mode = #tpu.pipeline_mode<synchronous>, transform_indices = @transform_0, window_bounds = array<i64: 16, 16>}, {pipeline_mode = #tpu.pipeline_mode<synchronous>, transform_indices = @transform_1, window_bounds = array<i64: 2, 32>}, {pipeline_mode = #tpu.pipeline_mode<synchronous>, transform_indices = @transform_2, window_bounds = array<i64: 2, 32>}, {pipeline_mode = #tpu.pipeline_mode<synchronous>, transform_indices = @transform_3, window_bounds = array<i64: 16, 128>}, {pipeline_mode = #tpu.pipeline_mode<synchronous>, transform_indices = @transform_4, window_bounds = array<i64: 32, 128>}, {pipeline_mode = #tpu.pipeline_mode<synchronous>, transform_indices = @transform_5, window_bounds = array<i64: 1, 128>}, {pipeline_mode = #tpu.pipeline_mode<synchronous>, transform_indices = @transform_6, window_bounds = array<i64: 32, 32>}, {pipeline_mode = #tpu.pipeline_mode<synchronous>, transform_indices = @transform_7, window_bounds = array<i64: 1, 32>}, {pipeline_mode = #tpu.pipeline_mode<synchronous>, transform_indices = @transform_8, window_bounds = array<i64: 2, 8, 32>}, {pipeline_mode = #tpu.pipeline_mode<synchronous>, transform_indices = @transform_9, window_bounds = array<i64: 2, 32>}, {pipeline_mode = #tpu.pipeline_mode<synchronous>, transform_indices = @transform_10, window_bounds = array<i64: 2, 32>}]} {
    %c0 = arith.constant 0 : index
    %c0_0 = arith.constant 0 : index
    %0 = vector.load %arg1[%c0, %c0_0] : memref<16x16xf32, #tpu.memory_space<vmem>>, vector<16x16xf32>
    %c0_1 = arith.constant 0 : index
    %c0_2 = arith.constant 0 : index
    %1 = vector.load %arg4[%c0_1, %c0_2] : memref<16x128xf32, #tpu.memory_space<vmem>>, vector<16x128xf32>
    %cst = arith.constant dense<0.000000e+00> : vector<16x128xf32>
    %2 = tpu.matmul %0, %1, %cst {dimension_numbers = #tpu.dot_dimension_numbers<[1], [0], [0], [1], [0, 0, 1, 1], [], []>} : vector<16x16xf32>, vector<16x128xf32>, vector<16x128xf32> -> vector<16x128xf32>
    %c0_3 = arith.constant 0 : index
    %c0_4 = arith.constant 0 : index
    %3 = vector.load %arg6[%c0_3, %c0_4] : memref<1x128xf32, #tpu.memory_space<vmem>>, vector<1x128xf32>
    %4 = vector.broadcast %3 : vector<1x128xf32> to vector<16x128xf32>
    %5 = arith.addf %2, %4 : vector<16x128xf32>
    %c0_5 = arith.constant 0 : index
    %c0_6 = arith.constant 0 : index
    %6 = vector.load %arg12[%c0_5, %c0_6] : memref<16x128xf32, #tpu.memory_space<vmem>>, vector<16x128xf32>
    tpu.vector_store %arg12[%c0_5, %c0_6], %5 {strides = array<i32>} : memref<16x128xf32, #tpu.memory_space<vmem>>, vector<16x128xf32>,
    %c0_7 = arith.constant 0 : index
    %c0_8 = arith.constant 0 : index
    %7 = vector.load %arg5[%c0_7, %c0_8] : memref<32x128xf32, #tpu.memory_space<vmem>>, vector<32x128xf32>
    %c0_9 = arith.constant 0 : index
    %c0_10 = arith.constant 0 : index
    %8 = vector.load %arg2[%c0_9, %c0_10] : memref<2x32xf32, #tpu.memory_space<vmem>>, vector<2x32xf32>
    %c0_11 = arith.constant 0 : index
    %c0_12 = arith.constant 0 : index
    %9 = vector.load %arg3[%c0_11, %c0_12] : memref<2x32xf32, #tpu.memory_space<vmem>>, vector<2x32xf32>
    %c0_13 = arith.constant 0 : index
    %c0_14 = arith.constant 0 : index
    %10 = vector.load %arg12[%c0_13, %c0_14] : memref<16x128xf32, #tpu.memory_space<vmem>>, vector<2x128xf32>
    %cst_15 = arith.constant dense<0.000000e+00> : vector<2x128xf32>
    %11 = tpu.matmul %8, %7, %cst_15 {dimension_numbers = #tpu.dot_dimension_numbers<[1], [0], [0], [1], [0, 0, 1, 1], [], []>} : vector<2x32xf32>, vector<32x128xf32>, vector<2x128xf32> -> vector<2x128xf32>
    %12 = arith.addf %10, %11 : vector<2x128xf32>
    %13 = vector.extract_strided_slice %12 {offsets = [0, 0], sizes = [2, 32], strides = [1, 1]} : vector<2x128xf32> to vector<2x32xf32>
    %14 = arith.negf %13 : vector<2x32xf32>
    %15 = math.exp %14 : vector<2x32xf32>
    %cst_16 = arith.constant 1.000000e+00 : f32
    %16 = vector.broadcast %cst_16 : f32 to vector<2x32xf32>
    %17 = arith.addf %16, %15 : vector<2x32xf32>
    %18 = arith.divf %16, %17 : vector<2x32xf32>
    %19 = vector.extract_strided_slice %12 {offsets = [0, 32], sizes = [2, 32], strides = [1, 1]} : vector<2x128xf32> to vector<2x32xf32>
    %20 = arith.negf %19 : vector<2x32xf32>
    %21 = math.exp %20 : vector<2x32xf32>
    %cst_17 = arith.constant 1.000000e+00 : f32
    %22 = vector.broadcast %cst_17 : f32 to vector<2x32xf32>
    %23 = arith.addf %22, %21 : vector<2x32xf32>
    %24 = arith.divf %22, %23 : vector<2x32xf32>
    %25 = vector.extract_strided_slice %12 {offsets = [0, 64], sizes = [2, 32], strides = [1, 1]} : vector<2x128xf32> to vector<2x32xf32>
    %26 = math.tanh %25 : vector<2x32xf32>
    %27 = vector.extract_strided_slice %12 {offsets = [0, 96], sizes = [2, 32], strides = [1, 1]} : vector<2x128xf32> to vector<2x32xf32>
    %28 = arith.negf %27 : vector<2x32xf32>
    %29 = math.exp %28 : vector<2x32xf32>
    %cst_18 = arith.constant 1.000000e+00 : f32
    %30 = vector.broadcast %cst_18 : f32 to vector<2x32xf32>
    %31 = arith.addf %30, %29 : vector<2x32xf32>
    %32 = arith.divf %30, %31 : vector<2x32xf32>
    %33 = arith.mulf %24, %9 : vector<2x32xf32>
    %34 = arith.mulf %18, %26 : vector<2x32xf32>
    %35 = arith.addf %33, %34 : vector<2x32xf32>
    %36 = math.tanh %35 : vector<2x32xf32>
    %37 = arith.mulf %32, %36 : vector<2x32xf32>
    %c0_19 = arith.constant 0 : index
    %c0_20 = arith.constant 0 : index
    %c0_21 = arith.constant 0 : index
    %38 = vector.load %arg13[%c0_19, %c0_20, %c0_21] : memref<2x8x32xf32, #tpu.memory_space<vmem>>, vector<2x1x32xf32>
    %39 = vector.shape_cast %38 : vector<2x1x32xf32> to vector<2x32xf32>
    %40 = vector.shape_cast %37 : vector<2x32xf32> to vector<2x1x32xf32>
    tpu.vector_store %arg13[%c0_19, %c0_20, %c0_21], %40 {strides = array<i32>} : memref<2x8x32xf32, #tpu.memory_space<vmem>>, vector<2x1x32xf32>,
    %c2 = arith.constant 2 : index
    %c0_22 = arith.constant 0 : index
    %41 = vector.load %arg12[%c2, %c0_22] : memref<16x128xf32, #tpu.memory_space<vmem>>, vector<2x128xf32>
    %cst_23 = arith.constant dense<0.000000e+00> : vector<2x128xf32>
    %42 = tpu.matmul %37, %7, %cst_23 {dimension_numbers = #tpu.dot_dimension_numbers<[1], [0], [0], [1], [0, 0, 1, 1], [], []>} : vector<2x32xf32>, vector<32x128xf32>, vector<2x128xf32> -> vector<2x128xf32>
    %43 = arith.addf %41, %42 : vector<2x128xf32>
    %44 = vector.extract_strided_slice %43 {offsets = [0, 0], sizes = [2, 32], strides = [1, 1]} : vector<2x128xf32> to vector<2x32xf32>
    %45 = arith.negf %44 : vector<2x32xf32>
    %46 = math.exp %45 : vector<2x32xf32>
    %cst_24 = arith.constant 1.000000e+00 : f32
    %47 = vector.broadcast %cst_24 : f32 to vector<2x32xf32>
    %48 = arith.addf %47, %46 : vector<2x32xf32>
    %49 = arith.divf %47, %48 : vector<2x32xf32>
    %50 = vector.extract_strided_slice %43 {offsets = [0, 32], sizes = [2, 32], strides = [1, 1]} : vector<2x128xf32> to vector<2x32xf32>
    %51 = arith.negf %50 : vector<2x32xf32>
    %52 = math.exp %51 : vector<2x32xf32>
    %cst_25 = arith.constant 1.000000e+00 : f32
    %53 = vector.broadcast %cst_25 : f32 to vector<2x32xf32>
    %54 = arith.addf %53, %52 : vector<2x32xf32>
    %55 = arith.divf %53, %54 : vector<2x32xf32>
    %56 = vector.extract_strided_slice %43 {offsets = [0, 64], sizes = [2, 32], strides = [1, 1]} : vector<2x128xf32> to vector<2x32xf32>
    %57 = math.tanh %56 : vector<2x32xf32>
    %58 = vector.extract_strided_slice %43 {offsets = [0, 96], sizes = [2, 32], strides = [1, 1]} : vector<2x128xf32> to vector<2x32xf32>
    %59 = arith.negf %58 : vector<2x32xf32>
    %60 = math.exp %59 : vector<2x32xf32>
    %cst_26 = arith.constant 1.000000e+00 : f32
    %61 = vector.broadcast %cst_26 : f32 to vector<2x32xf32>
    %62 = arith.addf %61, %60 : vector<2x32xf32>
    %63 = arith.divf %61, %62 : vector<2x32xf32>
    %64 = arith.mulf %55, %35 : vector<2x32xf32>
    %65 = arith.mulf %49, %57 : vector<2x32xf32>
    %66 = arith.addf %64, %65 : vector<2x32xf32>
    %67 = math.tanh %66 : vector<2x32xf32>
    %68 = arith.mulf %63, %67 : vector<2x32xf32>
    %c0_27 = arith.constant 0 : index
    %c1 = arith.constant 1 : index
    %c0_28 = arith.constant 0 : index
    %69 = vector.load %arg13[%c0_27, %c1, %c0_28] : memref<2x8x32xf32, #tpu.memory_space<vmem>>, vector<2x1x32xf32>
    %70 = vector.shape_cast %69 : vector<2x1x32xf32> to vector<2x32xf32>
    %71 = vector.shape_cast %68 : vector<2x32xf32> to vector<2x1x32xf32>
    tpu.vector_store %arg13[%c0_27, %c1, %c0_28], %71 {strides = array<i32>} : memref<2x8x32xf32, #tpu.memory_space<vmem>>, vector<2x1x32xf32>,
    %c4 = arith.constant 4 : index
    %c0_29 = arith.constant 0 : index
    %72 = vector.load %arg12[%c4, %c0_29] : memref<16x128xf32, #tpu.memory_space<vmem>>, vector<2x128xf32>
    %cst_30 = arith.constant dense<0.000000e+00> : vector<2x128xf32>
    %73 = tpu.matmul %68, %7, %cst_30 {dimension_numbers = #tpu.dot_dimension_numbers<[1], [0], [0], [1], [0, 0, 1, 1], [], []>} : vector<2x32xf32>, vector<32x128xf32>, vector<2x128xf32> -> vector<2x128xf32>
    %74 = arith.addf %72, %73 : vector<2x128xf32>
    %75 = vector.extract_strided_slice %74 {offsets = [0, 0], sizes = [2, 32], strides = [1, 1]} : vector<2x128xf32> to vector<2x32xf32>
    %76 = arith.negf %75 : vector<2x32xf32>
    %77 = math.exp %76 : vector<2x32xf32>
    %cst_31 = arith.constant 1.000000e+00 : f32
    %78 = vector.broadcast %cst_31 : f32 to vector<2x32xf32>
    %79 = arith.addf %78, %77 : vector<2x32xf32>
    %80 = arith.divf %78, %79 : vector<2x32xf32>
    %81 = vector.extract_strided_slice %74 {offsets = [0, 32], sizes = [2, 32], strides = [1, 1]} : vector<2x128xf32> to vector<2x32xf32>
    %82 = arith.negf %81 : vector<2x32xf32>
    %83 = math.exp %82 : vector<2x32xf32>
    %cst_32 = arith.constant 1.000000e+00 : f32
    %84 = vector.broadcast %cst_32 : f32 to vector<2x32xf32>
    %85 = arith.addf %84, %83 : vector<2x32xf32>
    %86 = arith.divf %84, %85 : vector<2x32xf32>
    %87 = vector.extract_strided_slice %74 {offsets = [0, 64], sizes = [2, 32], strides = [1, 1]} : vector<2x128xf32> to vector<2x32xf32>
    %88 = math.tanh %87 : vector<2x32xf32>
    %89 = vector.extract_strided_slice %74 {offsets = [0, 96], sizes = [2, 32], strides = [1, 1]} : vector<2x128xf32> to vector<2x32xf32>
    %90 = arith.negf %89 : vector<2x32xf32>
    %91 = math.exp %90 : vector<2x32xf32>
    %cst_33 = arith.constant 1.000000e+00 : f32
    %92 = vector.broadcast %cst_33 : f32 to vector<2x32xf32>
    %93 = arith.addf %92, %91 : vector<2x32xf32>
    %94 = arith.divf %92, %93 : vector<2x32xf32>
    %95 = arith.mulf %86, %66 : vector<2x32xf32>
    %96 = arith.mulf %80, %88 : vector<2x32xf32>
    %97 = arith.addf %95, %96 : vector<2x32xf32>
    %98 = math.tanh %97 : vector<2x32xf32>
    %99 = arith.mulf %94, %98 : vector<2x32xf32>
    %c0_34 = arith.constant 0 : index
    %c2_35 = arith.constant 2 : index
    %c0_36 = arith.constant 0 : index
    %100 = vector.load %arg13[%c0_34, %c2_35, %c0_36] : memref<2x8x32xf32, #tpu.memory_space<vmem>>, vector<2x1x32xf32>
    %101 = vector.shape_cast %100 : vector<2x1x32xf32> to vector<2x32xf32>
    %102 = vector.shape_cast %99 : vector<2x32xf32> to vector<2x1x32xf32>
    tpu.vector_store %arg13[%c0_34, %c2_35, %c0_36], %102 {strides = array<i32>} : memref<2x8x32xf32, #tpu.memory_space<vmem>>, vector<2x1x32xf32>,
    %c6 = arith.constant 6 : index
    %c0_37 = arith.constant 0 : index
    %103 = vector.load %arg12[%c6, %c0_37] : memref<16x128xf32, #tpu.memory_space<vmem>>, vector<2x128xf32>
    %cst_38 = arith.constant dense<0.000000e+00> : vector<2x128xf32>
    %104 = tpu.matmul %99, %7, %cst_38 {dimension_numbers = #tpu.dot_dimension_numbers<[1], [0], [0], [1], [0, 0, 1, 1], [], []>} : vector<2x32xf32>, vector<32x128xf32>, vector<2x128xf32> -> vector<2x128xf32>
    %105 = arith.addf %103, %104 : vector<2x128xf32>
    %106 = vector.extract_strided_slice %105 {offsets = [0, 0], sizes = [2, 32], strides = [1, 1]} : vector<2x128xf32> to vector<2x32xf32>
    %107 = arith.negf %106 : vector<2x32xf32>
    %108 = math.exp %107 : vector<2x32xf32>
    %cst_39 = arith.constant 1.000000e+00 : f32
    %109 = vector.broadcast %cst_39 : f32 to vector<2x32xf32>
    %110 = arith.addf %109, %108 : vector<2x32xf32>
    %111 = arith.divf %109, %110 : vector<2x32xf32>
    %112 = vector.extract_strided_slice %105 {offsets = [0, 32], sizes = [2, 32], strides = [1, 1]} : vector<2x128xf32> to vector<2x32xf32>
    %113 = arith.negf %112 : vector<2x32xf32>
    %114 = math.exp %113 : vector<2x32xf32>
    %cst_40 = arith.constant 1.000000e+00 : f32
    %115 = vector.broadcast %cst_40 : f32 to vector<2x32xf32>
    %116 = arith.addf %115, %114 : vector<2x32xf32>
    %117 = arith.divf %115, %116 : vector<2x32xf32>
    %118 = vector.extract_strided_slice %105 {offsets = [0, 64], sizes = [2, 32], strides = [1, 1]} : vector<2x128xf32> to vector<2x32xf32>
    %119 = math.tanh %118 : vector<2x32xf32>
    %120 = vector.extract_strided_slice %105 {offsets = [0, 96], sizes = [2, 32], strides = [1, 1]} : vector<2x128xf32> to vector<2x32xf32>
    %121 = arith.negf %120 : vector<2x32xf32>
    %122 = math.exp %121 : vector<2x32xf32>
    %cst_41 = arith.constant 1.000000e+00 : f32
    %123 = vector.broadcast %cst_41 : f32 to vector<2x32xf32>
    %124 = arith.addf %123, %122 : vector<2x32xf32>
    %125 = arith.divf %123, %124 : vector<2x32xf32>
    %126 = arith.mulf %117, %97 : vector<2x32xf32>
    %127 = arith.mulf %111, %119 : vector<2x32xf32>
    %128 = arith.addf %126, %127 : vector<2x32xf32>
    %129 = math.tanh %128 : vector<2x32xf32>
    %130 = arith.mulf %125, %129 : vector<2x32xf32>
    %c0_42 = arith.constant 0 : index
    %c3 = arith.constant 3 : index
    %c0_43 = arith.constant 0 : index
    %131 = vector.load %arg13[%c0_42, %c3, %c0_43] : memref<2x8x32xf32, #tpu.memory_space<vmem>>, vector<2x1x32xf32>
    %132 = vector.shape_cast %131 : vector<2x1x32xf32> to vector<2x32xf32>
    %133 = vector.shape_cast %130 : vector<2x32xf32> to vector<2x1x32xf32>
    tpu.vector_store %arg13[%c0_42, %c3, %c0_43], %133 {strides = array<i32>} : memref<2x8x32xf32, #tpu.memory_space<vmem>>, vector<2x1x32xf32>,
    %c8 = arith.constant 8 : index
    %c0_44 = arith.constant 0 : index
    %134 = vector.load %arg12[%c8, %c0_44] : memref<16x128xf32, #tpu.memory_space<vmem>>, vector<2x128xf32>
    %cst_45 = arith.constant dense<0.000000e+00> : vector<2x128xf32>
    %135 = tpu.matmul %130, %7, %cst_45 {dimension_numbers = #tpu.dot_dimension_numbers<[1], [0], [0], [1], [0, 0, 1, 1], [], []>} : vector<2x32xf32>, vector<32x128xf32>, vector<2x128xf32> -> vector<2x128xf32>
    %136 = arith.addf %134, %135 : vector<2x128xf32>
    %137 = vector.extract_strided_slice %136 {offsets = [0, 0], sizes = [2, 32], strides = [1, 1]} : vector<2x128xf32> to vector<2x32xf32>
    %138 = arith.negf %137 : vector<2x32xf32>
    %139 = math.exp %138 : vector<2x32xf32>
    %cst_46 = arith.constant 1.000000e+00 : f32
    %140 = vector.broadcast %cst_46 : f32 to vector<2x32xf32>
    %141 = arith.addf %140, %139 : vector<2x32xf32>
    %142 = arith.divf %140, %141 : vector<2x32xf32>
    %143 = vector.extract_strided_slice %136 {offsets = [0, 32], sizes = [2, 32], strides = [1, 1]} : vector<2x128xf32> to vector<2x32xf32>
    %144 = arith.negf %143 : vector<2x32xf32>
    %145 = math.exp %144 : vector<2x32xf32>
    %cst_47 = arith.constant 1.000000e+00 : f32
    %146 = vector.broadcast %cst_47 : f32 to vector<2x32xf32>
    %147 = arith.addf %146, %145 : vector<2x32xf32>
    %148 = arith.divf %146, %147 : vector<2x32xf32>
    %149 = vector.extract_strided_slice %136 {offsets = [0, 64], sizes = [2, 32], strides = [1, 1]} : vector<2x128xf32> to vector<2x32xf32>
    %150 = math.tanh %149 : vector<2x32xf32>
    %151 = vector.extract_strided_slice %136 {offsets = [0, 96], sizes = [2, 32], strides = [1, 1]} : vector<2x128xf32> to vector<2x32xf32>
    %152 = arith.negf %151 : vector<2x32xf32>
    %153 = math.exp %152 : vector<2x32xf32>
    %cst_48 = arith.constant 1.000000e+00 : f32
    %154 = vector.broadcast %cst_48 : f32 to vector<2x32xf32>
    %155 = arith.addf %154, %153 : vector<2x32xf32>
    %156 = arith.divf %154, %155 : vector<2x32xf32>
    %157 = arith.mulf %148, %128 : vector<2x32xf32>
    %158 = arith.mulf %142, %150 : vector<2x32xf32>
    %159 = arith.addf %157, %158 : vector<2x32xf32>
    %160 = math.tanh %159 : vector<2x32xf32>
    %161 = arith.mulf %156, %160 : vector<2x32xf32>
    %c0_49 = arith.constant 0 : index
    %c4_50 = arith.constant 4 : index
    %c0_51 = arith.constant 0 : index
    %162 = vector.load %arg13[%c0_49, %c4_50, %c0_51] : memref<2x8x32xf32, #tpu.memory_space<vmem>>, vector<2x1x32xf32>
    %163 = vector.shape_cast %162 : vector<2x1x32xf32> to vector<2x32xf32>
    %164 = vector.shape_cast %161 : vector<2x32xf32> to vector<2x1x32xf32>
    tpu.vector_store %arg13[%c0_49, %c4_50, %c0_51], %164 {strides = array<i32>} : memref<2x8x32xf32, #tpu.memory_space<vmem>>, vector<2x1x32xf32>,
    %c10 = arith.constant 10 : index
    %c0_52 = arith.constant 0 : index
    %165 = vector.load %arg12[%c10, %c0_52] : memref<16x128xf32, #tpu.memory_space<vmem>>, vector<2x128xf32>
    %cst_53 = arith.constant dense<0.000000e+00> : vector<2x128xf32>
    %166 = tpu.matmul %161, %7, %cst_53 {dimension_numbers = #tpu.dot_dimension_numbers<[1], [0], [0], [1], [0, 0, 1, 1], [], []>} : vector<2x32xf32>, vector<32x128xf32>, vector<2x128xf32> -> vector<2x128xf32>
    %167 = arith.addf %165, %166 : vector<2x128xf32>
    %168 = vector.extract_strided_slice %167 {offsets = [0, 0], sizes = [2, 32], strides = [1, 1]} : vector<2x128xf32> to vector<2x32xf32>
    %169 = arith.negf %168 : vector<2x32xf32>
    %170 = math.exp %169 : vector<2x32xf32>
    %cst_54 = arith.constant 1.000000e+00 : f32
    %171 = vector.broadcast %cst_54 : f32 to vector<2x32xf32>
    %172 = arith.addf %171, %170 : vector<2x32xf32>
    %173 = arith.divf %171, %172 : vector<2x32xf32>
    %174 = vector.extract_strided_slice %167 {offsets = [0, 32], sizes = [2, 32], strides = [1, 1]} : vector<2x128xf32> to vector<2x32xf32>
    %175 = arith.negf %174 : vector<2x32xf32>
    %176 = math.exp %175 : vector<2x32xf32>
    %cst_55 = arith.constant 1.000000e+00 : f32
    %177 = vector.broadcast %cst_55 : f32 to vector<2x32xf32>
    %178 = arith.addf %177, %176 : vector<2x32xf32>
    %179 = arith.divf %177, %178 : vector<2x32xf32>
    %180 = vector.extract_strided_slice %167 {offsets = [0, 64], sizes = [2, 32], strides = [1, 1]} : vector<2x128xf32> to vector<2x32xf32>
    %181 = math.tanh %180 : vector<2x32xf32>
    %182 = vector.extract_strided_slice %167 {offsets = [0, 96], sizes = [2, 32], strides = [1, 1]} : vector<2x128xf32> to vector<2x32xf32>
    %183 = arith.negf %182 : vector<2x32xf32>
    %184 = math.exp %183 : vector<2x32xf32>
    %cst_56 = arith.constant 1.000000e+00 : f32
    %185 = vector.broadcast %cst_56 : f32 to vector<2x32xf32>
    %186 = arith.addf %185, %184 : vector<2x32xf32>
    %187 = arith.divf %185, %186 : vector<2x32xf32>
    %188 = arith.mulf %179, %159 : vector<2x32xf32>
    %189 = arith.mulf %173, %181 : vector<2x32xf32>
    %190 = arith.addf %188, %189 : vector<2x32xf32>
    %191 = math.tanh %190 : vector<2x32xf32>
    %192 = arith.mulf %187, %191 : vector<2x32xf32>
    %c0_57 = arith.constant 0 : index
    %c5 = arith.constant 5 : index
    %c0_58 = arith.constant 0 : index
    %193 = vector.load %arg13[%c0_57, %c5, %c0_58] : memref<2x8x32xf32, #tpu.memory_space<vmem>>, vector<2x1x32xf32>
    %194 = vector.shape_cast %193 : vector<2x1x32xf32> to vector<2x32xf32>
    %195 = vector.shape_cast %192 : vector<2x32xf32> to vector<2x1x32xf32>
    tpu.vector_store %arg13[%c0_57, %c5, %c0_58], %195 {strides = array<i32>} : memref<2x8x32xf32, #tpu.memory_space<vmem>>, vector<2x1x32xf32>,
    %c12 = arith.constant 12 : index
    %c0_59 = arith.constant 0 : index
    %196 = vector.load %arg12[%c12, %c0_59] : memref<16x128xf32, #tpu.memory_space<vmem>>, vector<2x128xf32>
    %cst_60 = arith.constant dense<0.000000e+00> : vector<2x128xf32>
    %197 = tpu.matmul %192, %7, %cst_60 {dimension_numbers = #tpu.dot_dimension_numbers<[1], [0], [0], [1], [0, 0, 1, 1], [], []>} : vector<2x32xf32>, vector<32x128xf32>, vector<2x128xf32> -> vector<2x128xf32>
    %198 = arith.addf %196, %197 : vector<2x128xf32>
    %199 = vector.extract_strided_slice %198 {offsets = [0, 0], sizes = [2, 32], strides = [1, 1]} : vector<2x128xf32> to vector<2x32xf32>
    %200 = arith.negf %199 : vector<2x32xf32>
    %201 = math.exp %200 : vector<2x32xf32>
    %cst_61 = arith.constant 1.000000e+00 : f32
    %202 = vector.broadcast %cst_61 : f32 to vector<2x32xf32>
    %203 = arith.addf %202, %201 : vector<2x32xf32>
    %204 = arith.divf %202, %203 : vector<2x32xf32>
    %205 = vector.extract_strided_slice %198 {offsets = [0, 32], sizes = [2, 32], strides = [1, 1]} : vector<2x128xf32> to vector<2x32xf32>
    %206 = arith.negf %205 : vector<2x32xf32>
    %207 = math.exp %206 : vector<2x32xf32>
    %cst_62 = arith.constant 1.000000e+00 : f32
    %208 = vector.broadcast %cst_62 : f32 to vector<2x32xf32>
    %209 = arith.addf %208, %207 : vector<2x32xf32>
    %210 = arith.divf %208, %209 : vector<2x32xf32>
    %211 = vector.extract_strided_slice %198 {offsets = [0, 64], sizes = [2, 32], strides = [1, 1]} : vector<2x128xf32> to vector<2x32xf32>
    %212 = math.tanh %211 : vector<2x32xf32>
    %213 = vector.extract_strided_slice %198 {offsets = [0, 96], sizes = [2, 32], strides = [1, 1]} : vector<2x128xf32> to vector<2x32xf32>
    %214 = arith.negf %213 : vector<2x32xf32>
    %215 = math.exp %214 : vector<2x32xf32>
    %cst_63 = arith.constant 1.000000e+00 : f32
    %216 = vector.broadcast %cst_63 : f32 to vector<2x32xf32>
    %217 = arith.addf %216, %215 : vector<2x32xf32>
    %218 = arith.divf %216, %217 : vector<2x32xf32>
    %219 = arith.mulf %210, %190 : vector<2x32xf32>
    %220 = arith.mulf %204, %212 : vector<2x32xf32>
    %221 = arith.addf %219, %220 : vector<2x32xf32>
    %222 = math.tanh %221 : vector<2x32xf32>
    %223 = arith.mulf %218, %222 : vector<2x32xf32>
    %c0_64 = arith.constant 0 : index
    %c6_65 = arith.constant 6 : index
    %c0_66 = arith.constant 0 : index
    %224 = vector.load %arg13[%c0_64, %c6_65, %c0_66] : memref<2x8x32xf32, #tpu.memory_space<vmem>>, vector<2x1x32xf32>
    %225 = vector.shape_cast %224 : vector<2x1x32xf32> to vector<2x32xf32>
    %226 = vector.shape_cast %223 : vector<2x32xf32> to vector<2x1x32xf32>
    tpu.vector_store %arg13[%c0_64, %c6_65, %c0_66], %226 {strides = array<i32>} : memref<2x8x32xf32, #tpu.memory_space<vmem>>, vector<2x1x32xf32>,
    %c14 = arith.constant 14 : index
    %c0_67 = arith.constant 0 : index
    %227 = vector.load %arg12[%c14, %c0_67] : memref<16x128xf32, #tpu.memory_space<vmem>>, vector<2x128xf32>
    %cst_68 = arith.constant dense<0.000000e+00> : vector<2x128xf32>
    %228 = tpu.matmul %223, %7, %cst_68 {dimension_numbers = #tpu.dot_dimension_numbers<[1], [0], [0], [1], [0, 0, 1, 1], [], []>} : vector<2x32xf32>, vector<32x128xf32>, vector<2x128xf32> -> vector<2x128xf32>
    %229 = arith.addf %227, %228 : vector<2x128xf32>
    %230 = vector.extract_strided_slice %229 {offsets = [0, 0], sizes = [2, 32], strides = [1, 1]} : vector<2x128xf32> to vector<2x32xf32>
    %231 = arith.negf %230 : vector<2x32xf32>
    %232 = math.exp %231 : vector<2x32xf32>
    %cst_69 = arith.constant 1.000000e+00 : f32
    %233 = vector.broadcast %cst_69 : f32 to vector<2x32xf32>
    %234 = arith.addf %233, %232 : vector<2x32xf32>
    %235 = arith.divf %233, %234 : vector<2x32xf32>
    %236 = vector.extract_strided_slice %229 {offsets = [0, 32], sizes = [2, 32], strides = [1, 1]} : vector<2x128xf32> to vector<2x32xf32>
    %237 = arith.negf %236 : vector<2x32xf32>
    %238 = math.exp %237 : vector<2x32xf32>
    %cst_70 = arith.constant 1.000000e+00 : f32
    %239 = vector.broadcast %cst_70 : f32 to vector<2x32xf32>
    %240 = arith.addf %239, %238 : vector<2x32xf32>
    %241 = arith.divf %239, %240 : vector<2x32xf32>
    %242 = vector.extract_strided_slice %229 {offsets = [0, 64], sizes = [2, 32], strides = [1, 1]} : vector<2x128xf32> to vector<2x32xf32>
    %243 = math.tanh %242 : vector<2x32xf32>
    %244 = vector.extract_strided_slice %229 {offsets = [0, 96], sizes = [2, 32], strides = [1, 1]} : vector<2x128xf32> to vector<2x32xf32>
    %245 = arith.negf %244 : vector<2x32xf32>
    %246 = math.exp %245 : vector<2x32xf32>
    %cst_71 = arith.constant 1.000000e+00 : f32
    %247 = vector.broadcast %cst_71 : f32 to vector<2x32xf32>
    %248 = arith.addf %247, %246 : vector<2x32xf32>
    %249 = arith.divf %247, %248 : vector<2x32xf32>
    %250 = arith.mulf %241, %221 : vector<2x32xf32>
    %251 = arith.mulf %235, %243 : vector<2x32xf32>
    %252 = arith.addf %250, %251 : vector<2x32xf32>
    %253 = math.tanh %252 : vector<2x32xf32>
    %254 = arith.mulf %249, %253 : vector<2x32xf32>
    %c0_72 = arith.constant 0 : index
    %c7 = arith.constant 7 : index
    %c0_73 = arith.constant 0 : index
    %255 = vector.load %arg13[%c0_72, %c7, %c0_73] : memref<2x8x32xf32, #tpu.memory_space<vmem>>, vector<2x1x32xf32>
    %256 = vector.shape_cast %255 : vector<2x1x32xf32> to vector<2x32xf32>
    %257 = vector.shape_cast %254 : vector<2x32xf32> to vector<2x1x32xf32>
    tpu.vector_store %arg13[%c0_72, %c7, %c0_73], %257 {strides = array<i32>} : memref<2x8x32xf32, #tpu.memory_space<vmem>>, vector<2x1x32xf32>,
    %c0_74 = arith.constant 0 : index
    %c0_75 = arith.constant 0 : index
    %258 = vector.load %arg10[%c0_74, %c0_75] : memref<2x32xf32, #tpu.memory_space<vmem>>, vector<2x32xf32>
    tpu.vector_store %arg10[%c0_74, %c0_75], %254 {strides = array<i32>} : memref<2x32xf32, #tpu.memory_space<vmem>>, vector<2x32xf32>,
    %c0_76 = arith.constant 0 : index
    %c0_77 = arith.constant 0 : index
    %259 = vector.load %arg11[%c0_76, %c0_77] : memref<2x32xf32, #tpu.memory_space<vmem>>, vector<2x32xf32>
    tpu.vector_store %arg11[%c0_76, %c0_77], %252 {strides = array<i32>} : memref<2x32xf32, #tpu.memory_space<vmem>>, vector<2x32xf32>,
    %c0_78 = arith.constant 0 : index
    %c0_79 = arith.constant 0 : index
    %c0_80 = arith.constant 0 : index
    %260 = vector.load %arg13[%c0_78, %c0_79, %c0_80] : memref<2x8x32xf32, #tpu.memory_space<vmem>>, vector<2x8x32xf32>
    %261 = vector.shape_cast %260 : vector<2x8x32xf32> to vector<16x32xf32>
    %c0_81 = arith.constant 0 : index
    %c0_82 = arith.constant 0 : index
    %262 = vector.load %arg7[%c0_81, %c0_82] : memref<32x32xf32, #tpu.memory_space<vmem>>, vector<32x32xf32>
    %cst_83 = arith.constant dense<0.000000e+00> : vector<16x32xf32>
    %263 = tpu.matmul %261, %262, %cst_83 {dimension_numbers = #tpu.dot_dimension_numbers<[1], [0], [0], [1], [0, 0, 1, 1], [], []>} : vector<16x32xf32>, vector<32x32xf32>, vector<16x32xf32> -> vector<16x32xf32>
    %c0_84 = arith.constant 0 : index
    %c0_85 = arith.constant 0 : index
    %264 = vector.load %arg8[%c0_84, %c0_85] : memref<1x32xf32, #tpu.memory_space<vmem>>, vector<1x32xf32>
    %265 = vector.broadcast %264 : vector<1x32xf32> to vector<16x32xf32>
    %266 = arith.addf %263, %265 : vector<16x32xf32>
    %267 = vector.shape_cast %266 : vector<16x32xf32> to vector<2x8x32xf32>
    %c0_86 = arith.constant 0 : index
    %c0_87 = arith.constant 0 : index
    %c0_88 = arith.constant 0 : index
    %268 = vector.load %arg9[%c0_86, %c0_87, %c0_88] : memref<2x8x32xf32, #tpu.memory_space<vmem>>, vector<2x8x32xf32>
    tpu.vector_store %arg9[%c0_86, %c0_87, %c0_88], %267 {strides = array<i32>} : memref<2x8x32xf32, #tpu.memory_space<vmem>>, vector<2x8x32xf32>,
    return
  }
  func.func @transform_0(%arg0: i32) -> (i32, i32) {
    %c0_i32 = arith.constant 0 : i32
    %c0_i32_0 = arith.constant 0 : i32
    %c0_i32_1 = arith.constant 0 : i32
    return %c0_i32, %c0_i32_0 : i32, i32
  }
  func.func @transform_1(%arg0: i32) -> (i32, i32) {
    %c0_i32 = arith.constant 0 : i32
    %c0_i32_0 = arith.constant 0 : i32
    %c0_i32_1 = arith.constant 0 : i32
    return %c0_i32, %c0_i32_0 : i32, i32
  }
  func.func @transform_2(%arg0: i32) -> (i32, i32) {
    %c0_i32 = arith.constant 0 : i32
    %c0_i32_0 = arith.constant 0 : i32
    %c0_i32_1 = arith.constant 0 : i32
    return %c0_i32, %c0_i32_0 : i32, i32
  }
  func.func @transform_3(%arg0: i32) -> (i32, i32) {
    %c0_i32 = arith.constant 0 : i32
    %c0_i32_0 = arith.constant 0 : i32
    %c0_i32_1 = arith.constant 0 : i32
    return %c0_i32, %c0_i32_0 : i32, i32
  }
  func.func @transform_4(%arg0: i32) -> (i32, i32) {
    %c0_i32 = arith.constant 0 : i32
    %c0_i32_0 = arith.constant 0 : i32
    %c0_i32_1 = arith.constant 0 : i32
    return %c0_i32, %c0_i32_0 : i32, i32
  }
  func.func @transform_5(%arg0: i32) -> (i32, i32) {
    %c0_i32 = arith.constant 0 : i32
    %c0_i32_0 = arith.constant 0 : i32
    %c0_i32_1 = arith.constant 0 : i32
    return %c0_i32, %c0_i32_0 : i32, i32
  }
  func.func @transform_6(%arg0: i32) -> (i32, i32) {
    %c0_i32 = arith.constant 0 : i32
    %c0_i32_0 = arith.constant 0 : i32
    %c0_i32_1 = arith.constant 0 : i32
    return %c0_i32, %c0_i32_0 : i32, i32
  }
  func.func @transform_7(%arg0: i32) -> (i32, i32) {
    %c0_i32 = arith.constant 0 : i32
    %c0_i32_0 = arith.constant 0 : i32
    %c0_i32_1 = arith.constant 0 : i32
    return %c0_i32, %c0_i32_0 : i32, i32
  }
  func.func @transform_8(%arg0: i32) -> (i32, i32, i32) {
    %c0_i32 = arith.constant 0 : i32
    %c0_i32_0 = arith.constant 0 : i32
    %c0_i32_1 = arith.constant 0 : i32
    %c0_i32_2 = arith.constant 0 : i32
    return %c0_i32, %c0_i32_0, %c0_i32_1 : i32, i32, i32
  }
  func.func @transform_9(%arg0: i32) -> (i32, i32) {
    %c0_i32 = arith.constant 0 : i32
    %c0_i32_0 = arith.constant 0 : i32
    %c0_i32_1 = arith.constant 0 : i32
    return %c0_i32, %c0_i32_0 : i32, i32
  }
  func.func @transform_10(%arg0: i32) -> (i32, i32) {
    %c0_i32 = arith.constant 0 : i32
    %c0_i32_0 = arith.constant 0 : i32
    %c0_i32_1 = arith.constant 0 : i32
    return %c0_i32, %c0_i32_0 : i32, i32
  }
}

</mosaic_0001>

<bundles_post_ra>
// kernel: tpu_custom_call.1
= control target key start
LH: loop header
LB: loop body
LE: loop exit
PB: predicated region body
PF: predicated region fallthrough
CT: control target
= control target key end

     0   :  { %16 = vsyncpa [#allocation5], 0  ;;  %s2265_s0 = inlined_call_operand.hbm [shape: f32[16,16], index: 0, kind: input, shape index: {}]   ;;  %s2266_s1 = inlined_call_operand.hbm [shape: f32[2,32], index: 1, kind: input, shape index: {}]   ;;  %s2267_s2 = inlined_call_operand.vmem [shape: f32[2,32], index: 2, kind: input, shape index: {}]   ;;  %s2268_s3 = inlined_call_operand.hbm [shape: f32[16,128], index: 3, kind: input, shape index: {}]   ;;  %s2269_s4 = inlined_call_operand.hbm [shape: f32[32,128], index: 4, kind: input, shape index: {}]   ;;  %s2270_s5 = inlined_call_operand.vmem [shape: f32[1,128], index: 5, kind: input, shape index: {}]   ;;  %s2271_s6 = inlined_call_operand.hbm [shape: f32[32,32], index: 6, kind: input, shape index: {}]   ;;  %s2272_s7 = inlined_call_operand.vmem [shape: f32[1,32], index: 7, kind: input, shape index: {}]   ;;  %s2273_s8 = inlined_call_operand.hbm [shape: f32[2,8,32], index: 8, kind: output, shape index: {0}]   ;;  %s2274_s9 = inlined_call_operand.hbm [shape: f32[2,32], index: 9, kind: output, shape index: {1}]   ;;  %s2275_s10 = inlined_call_operand.hbm [shape: f32[2,32], index: 10, kind: output, shape index: {2}]  }
   0x1   :  { %17 = vsyncpa [#allocation8], 0 }
   0x2   :  { %18 = vsyncpa [#allocation11], 0 }
   0x3   :  { %19 = vsyncpa [#allocation6], 0 }
   0x4   :  { %20 = vsyncpa [#allocation15], 0  ;;  %s1898_s13 = smov [#allocation7]  }
   0x5   :  { %s39_s14 = sshll.u32 %s1898_s13, 4  ;;  %s40_s14 = int_to_ptr.vmem [resolvable:$true] %s39_s14 }
   0x6   :  { %s1736_s15 = scalar_lea.vmem %s40_s14, 32  ;;  %p1741_p1 = scmp.lt.s32.totalorder %s40_s14, %s40_s14 }
   0x7   :  { %p1737_p0 = scmp.ne.s32.totalorder %s40_s14, %s1736_s15  ;;  %p1742_p2 = scmp.lt.s32.totalorder %s1736_s15, %s1736_s15 }
   0x9   :  { %p1743_p3 = por %p1742_p2, %p1741_p1 }
   0xb   :  { %p1744_p4 = pnand %p1743_p3, %p1737_p0 }
   0xd   :  { %1747 = shalt.err (!%p1744_p4)
}
   0xe   :  { %42 = dma.hbm_to_vmem [thread:$0]  %s2266_s1, 32, %s40_s14, [#allocation8]  }
   0xf   :  { %s1899_s18 = smov [#allocation10]   ;;  %s1900_s20 = smov [#allocation4]  }
  0x10   :  { %s62_s19 = sshll.u32 %s1899_s18, 4  ;;  %s26_s21 = sshll.u32 %s1900_s20, 4  ;;  %s63_s19 = int_to_ptr.vmem [resolvable:$true] %s62_s19  ;;  %s27_s21 = int_to_ptr.vmem [resolvable:$true] %s26_s21 }
  0x11   :  { %s1756_s22 = scalar_lea.vmem %s63_s19, 512  ;;  %p1761_p6 = scmp.lt.s32.totalorder %s63_s19, %s63_s19 }
  0x12   :  { %p1757_p5 = scmp.ne.s32.totalorder %s63_s19, %s1756_s22  ;;  %p1762_p7 = scmp.lt.s32.totalorder %s1756_s22, %s1756_s22 }
  0x14   :  { %p1763_p8 = por %p1762_p7, %p1761_p6 }
  0x16   :  { %p1764_p9 = pnand %p1763_p8, %p1757_p5 }
  0x18   :  { %1767 = shalt.err (!%p1764_p9)
}
  0x19   :  { %s1901_s23 = smov 128   ;;  %s1902_s24 = smov 8  }
  0x1a   :  { %68 = dma.hbm_to_vmem [thread:$0]  %s2269_s4, 512, %s63_s19, [#allocation11], %s1901_s23, %s1901_s23, %s1902_s24  }
  0x1b   :  { %s1776_s1 = scalar_lea.vmem %s27_s21, 256  ;;  %p1781_p11 = scmp.lt.s32.totalorder %s27_s21, %s27_s21 }
  0x1c   :  { %p1777_p10 = scmp.ne.s32.totalorder %s27_s21, %s1776_s1  ;;  %p1782_p12 = scmp.lt.s32.totalorder %s1776_s1, %s1776_s1 }
  0x1e   :  { %p1783_p13 = por %p1782_p12, %p1781_p11 }
  0x20   :  { %p1784_p0 = pnand %p1783_p13, %p1777_p10 }
  0x22   :  { %1787 = shalt.err (!%p1784_p0)
}
  0x23   :  { %32 = dma.hbm_to_vmem [thread:$0]  %s2265_s0, 256, %s27_s21, [#allocation5], %s1901_s23, %s1901_s23, %s1902_s24  }
  0x24   :  { %s1903_s29 = smov [#allocation9]   ;;  %s1904_s11 = smov [#allocation12]  }
  0x25   :  { %s50_s30 = sshll.u32 %s1903_s29, 4  ;;  %s76_s4 = sshll.u32 %s1904_s11, 4  ;;  %s51_s30 = int_to_ptr.vmem [resolvable:$true] %s50_s30  ;;  %s77_s4 = int_to_ptr.vmem [resolvable:$true] %s76_s4 }
  0x26   :  { %s1796_s12 = scalar_lea.vmem %s51_s30, 256  ;;  %p1801_p2 = scmp.lt.s32.totalorder %s51_s30, %s51_s30 }
  0x27   :  { %p1797_p1 = scmp.ne.s32.totalorder %s51_s30, %s1796_s12  ;;  %p1802_p3 = scmp.lt.s32.totalorder %s1796_s12, %s1796_s12 }
  0x29   :  { %p1803_p4 = por %p1802_p3, %p1801_p2 }
  0x2b   :  { %p1804_p5 = pnand %p1803_p4, %p1797_p1 }
  0x2d   :  { %1807 = shalt.err (!%p1804_p5)
}
  0x2e   :  { %56 = dma.hbm_to_vmem [thread:$0]  %s2268_s3, 256, %s51_s30, [#allocation8], %s1901_s23, %s1901_s23, %s1902_s24  }
  0x2f   :  { %s1816_s0 = scalar_lea.vmem %s77_s4, 512  ;;  %p1821_p7 = scmp.lt.s32.totalorder %s77_s4, %s77_s4 }
  0x30   :  { %p1817_p6 = scmp.ne.s32.totalorder %s77_s4, %s1816_s0  ;;  %p1822_p8 = scmp.lt.s32.totalorder %s1816_s0, %s1816_s0 }
  0x32   :  { %p1823_p9 = por %p1822_p8, %p1821_p7 }
  0x34   :  { %p1824_p10 = pnand %p1823_p9, %p1817_p6 }
  0x36   :  { %1827 = shalt.err (!%p1824_p10)
}
  0x37   :  { %82 = dma.hbm_to_vmem [thread:$0]  %s2271_s6, 512, %s77_s4, [#allocation11], %s1901_s23, %s1901_s23, %s1902_s24  }
  0x38   :  { %1888 = dma.done.wait [#allocation5], 256  }
  0x39   :  { %1889 = vsyncadd [#allocation5], 4294967040 }
  0x3a   :  { %1890 = dma.done.wait [#allocation8], 288  }
  0x3b   :  { %1891 = vsyncadd [#allocation8], 4294967008 }
  0x3c   :  { %1892 = dma.done.wait [#allocation11], 1024  }
  0x3d   :  { %1893 = vsyncadd [#allocation11], 4294966272  ;;  %v1905_v0 = vmov 0.0   ;;  %vm1906_vm0 = vmmov 0   ;;  %vm111_vm1 = vcmask 130048   ;;  %v103_v1 = vld [vmem:[#allocation9 + $0x8] sm:$0xff] }
  0x3e   :  { %1549 = vmatprep.subr.mxu1 %v1905_v0  ;;  %1557 = vmatprep.mubr.msk.f32.mxu1 %vm1906_vm0, %v1905_v0  ;;  %v102_v2 = vld [vmem:[#allocation9] sm:$0xff]  ;;  %v100_v3 = vld [vmem:[#allocation4] sm:$0xff]  ;;  %v101_v6 = vld [vmem:[#allocation4 + $0x8] sm:$0xff]  ;;  %vm202_vm2 = vcmask 261120   ;;  %s1907_s17 = smov 64   ;;  %vm342_vm3 = vcmask 253952  }
  0x3f   :  { %1542 = vmatprep.subr.mxu0 %v103_v1  ;;  %1546 = vmatprep.mubr.msk.f32.mxu0 %vm111_vm1, %v100_v3  ;;  %v2000_v4 = vld [vmem:[#allocation10 + $0x18] sm:$0xff]  ;;  %v2002_v5 = vld [vmem:[#allocation10 + $0x10] sm:$0xff]  ;;  %v2006_v7 = vld [vmem:[#allocation10 + $0x8] sm:$0xff]  ;;  %vm1321_vm4 = vcmask 254976   ;;  %s1911_s20 = smov [#allocation14]  }
  0x40   :  { %1543 = vmatpush3.msra.mxu0 %v103_v1  ;;  %1550 = vmatpush3.msra.mxu1 %v2000_v4  ;;  %v2011_v8 = vld [vmem:[#allocation10] sm:$0xff]  ;;  %v199_v9 = vld [vmem:[#allocation7] sm:$0x3]  ;;  %v1470_v10 = vld [vmem:[%s2270_s5] ss:$0 sm:$0xff]  ;;  %s1908_s5 = smov 32  }
  0x41   :  { %1544 = vmatprep.subr.mxu0 %v102_v2  ;;  %1551 = vmatprep.subr.mxu1 %v1905_v0  ;;  %v200_v20 = vld [vmem:[%s2267_s2] sm:$0x3]  ;;  %s1910_s2 = smov 96   ;;  %s1442_s21 = sshll.u32 %s1911_s20, 4  ;;  %s1443_s21 = int_to_ptr.vmem [resolvable:$true] %s1442_s21 }
  0x42   :  { %1545 = vmatpush3.msra.mxu0 %v102_v2  ;;  %1552 = vmatpush3.msra.mxu1 %v2002_v5  ;;  %s1828_s22 = scalar_lea.vmem %s1443_s21, 32  ;;  %p1833_p12 = scmp.lt.s32.totalorder %s1443_s21, %s1443_s21 }
  0x43   :  { %1547 = vmatmul.mubr.msk.f32.vlgmr.msra.gmra.mxu0 %vm111_vm1, %v101_v6  ;;  %1553 = vmatprep.subr.mxu1 %v1905_v0  ;;  %p1829_p11 = scmp.ne.s32.totalorder %s1443_s21, %s1828_s22  ;;  %p1834_p13 = scmp.lt.s32.totalorder %s1828_s22, %s1828_s22 }
  0x44   :  { %1554 = vmatpush3.msra.mxu1 %v2006_v7  ;;  %1560 = vmatprep.subr.mxu0 %v1905_v0 }
  0x45   :  { %1555 = vmatprep.subr.mxu1 %v1905_v0  ;;  %1561 = vmatpush3.msra.mxu0 %v2000_v4  ;;  %p1835_p0 = por %p1834_p13, %p1833_p12 }
  0x46   :  { %1556 = vmatpush3.msra.mxu1 %v2011_v8  ;;  %1562 = vmatprep.subr.mxu0 %v1905_v0 }
  0x47   :  { %1558 = vmatmul.mubr.msk.f32.vlgmr.msra.gmra.mxu1 %vm202_vm2, %v199_v9  ;;  %1563 = vmatpush3.msra.mxu0 %v2002_v5  ;;  %p1836_p1 = pnand %p1835_p0, %p1829_p11 }
  0x48   :  { %1564 = vmatprep.subr.mxu0 %v1905_v0  ;;  %1568 = vmatprep.mubr.msk.f32.mxu0 %vm1906_vm0, %v1905_v0 }
  0x49   :  { %1565 = vmatpush3.msra.mxu0 %v2006_v7  ;;  %1571 = vmatprep.subr.mxu1 %v1905_v0 }
  0x4a   :  { %1566 = vmatprep.subr.mxu0 %v1905_v0  ;;  %1572 = vmatpush3.msra.mxu1 %v2000_v4 }
  0x4b   :  { %1567 = vmatpush3.msra.mxu0 %v2011_v8  ;;  %1573 = vmatprep.subr.mxu1 %v1905_v0 }
  0x4c   :  { %1574 = vmatpush3.msra.mxu1 %v2002_v5  ;;  %1579 = vmatprep.mubr.msk.f32.mxu1 %vm1906_vm0, %v1905_v0 }
  0x4d   :  { %1575 = vmatprep.subr.mxu1 %v1905_v0  ;;  %1582 = vmatprep.subr.mxu0 %v1905_v0 }
  0x4e   :  { %1576 = vmatpush3.msra.mxu1 %v2006_v7 }
  0x4f   :  { %1577 = vmatprep.subr.mxu1 %v1905_v0 }
  0x50   :  { %1578 = vmatpush3.msra.mxu1 %v2011_v8 }
  0x51   :  { %1593 = vmatprep.subr.mxu1 %v1905_v0 }
 0x103   :  { %v1548_v11 = vpop.f32.mrf.mxu0 }
 0x104   :  { %v190_v12 = vadd.f32 %v1548_v11, %v1470_v10 }
 0x105   :  { %v184_v13 = vpop.f32.mrf.mxu0 }
 0x106   :  { %194 = vst [vmem:[#allocation2 + $0x8] sm:$0xff] %v190_v12  ;;  %v185_v14 = vadd.f32 %v1470_v10, %v184_v13 }
 0x107   :  { %v272_v15 = vpop.f32.mrf.mxu1 }
 0x108   :  { %193 = vst [vmem:[#allocation2] sm:$0xff] %v185_v14 }
 0x109   :  { %v1559_v16 = vpop.f32.mrf.mxu1 }
 0x10f   :  { %v201_v17 = vld [vmem:[#allocation2] sm:$0x3]  ;;  %v345_v35 = vld [vmem:[#allocation2 + $0x2] sm:$0x3]  ;;  %v484_v53 = vld [vmem:[#allocation2 + $0x4] sm:$0x3] }
 0x110   :  { %v276_v18 = vadd.f32 %v272_v15, %v201_v17  ;;  %v623_v12 = vld [vmem:[#allocation2 + $0x6] sm:$0x3] }
 0x112   :  { %1664 = vtanh.f32 %v276_v18  ;;  %v1474_v21 = vmul.f32 -1.442695, %v276_v18 }
 0x114   :  { %1666 = vpow2.f32 %v1474_v21 }
 0x11f   :  { %v1665_v19 = vpop.eup %1664 }
 0x120   :  { %290 = vrot.lane.b32.xlu0 %v1665_v19, %s1907_s17 }
 0x121   :  { %v1667_v22 = vpop.eup %1666 }
 0x122   :  { %v280_v23 = vadd.f32 1.0, %v1667_v22 }
 0x124   :  { %285 = vrot.lane.b32.xlu0 %v200_v20, %s1908_s5  ;;  %1668 = vrcp.f32 %v280_v23 }
 0x131   :  { %v1669_v24 = vpop.eup %1668 }
 0x192   :  { %v291_v25 = vpop.permute.xlu0 %290 }
 0x193   :  { %v293_v26 = vmul.f32 %v1669_v24, %v291_v25 }
 0x195   :  { %295 = vrot.lane.b32.xlu1 %v293_v26, %s1908_s5 }
 0x196   :  { %v286_v27 = vpop.permute.xlu0 %285 }
 0x197   :  { %v288_v28 = vmul.f32 %v1669_v24, %v286_v27 }
 0x207   :  { %v296_v29 = vpop.permute.xlu1 %295 }
 0x208   :  { %v298_v30 = vadd.f32 %v296_v29, %v288_v28 }
 0x20a   :  { %1670 = vtanh.f32 %v298_v30 }
 0x217   :  { %v1671_v31 = vpop.eup %1670 }
 0x218   :  { %301 = vrot.lane.b32.xlu1 %v1671_v31, %s1907_s17 }
 0x28a   :  { %v302_v32 = vpop.permute.xlu1 %301 }
 0x28b   :  { %v2049_v33 = vmul.f32 %v1669_v24, %v302_v32 }
 0x28d   :  { %346 = vrot.lane.b32.xlu0 %v2049_v33, %s1908_s5 }
 0x2ff   :  { %v347_v34 = vpop.permute.xlu0 %346 }
 0x300   :  { %1569 = vmatmul.mubr.msk.f32.vlgmr.msra.gmra.mxu0 %vm202_vm2, %v347_v34 }
 0x301   :  { %1583 = vmatpush3.msra.mxu0 %v2000_v4  ;;  %1590 = vmatprep.mubr.msk.f32.mxu0 %vm1906_vm0, %v1905_v0 }
 0x302   :  { %1584 = vmatprep.subr.mxu0 %v1905_v0 }
 0x303   :  { %1585 = vmatpush3.msra.mxu0 %v2002_v5 }
 0x304   :  { %1586 = vmatprep.subr.mxu0 %v1905_v0 }
 0x305   :  { %1587 = vmatpush3.msra.mxu0 %v2006_v7 }
 0x306   :  { %1588 = vmatprep.subr.mxu0 %v1905_v0 }
 0x307   :  { %1589 = vmatpush3.msra.mxu0 %v2011_v8 }
 0x308   :  { %1604 = vmatprep.subr.mxu0 %v1905_v0 }
 0x3c0   :  { %v416_v36 = vpop.f32.mrf.mxu0 }
 0x3c1   :  { %v420_v37 = vadd.f32 %v416_v36, %v345_v35 }
 0x3c2   :  { %v1570_v38 = vpop.f32.mrf.mxu0 }
 0x3c3   :  { %1672 = vtanh.f32 %v420_v37  ;;  %v1476_v40 = vmul.f32 -1.442695, %v420_v37 }
 0x3c5   :  { %1674 = vpow2.f32 %v1476_v40 }
 0x3d0   :  { %v1673_v39 = vpop.eup %1672 }
 0x3d1   :  { %430 = vrot.lane.b32.xlu1 %v1673_v39, %s1907_s17 }
 0x3d2   :  { %v1675_v41 = vpop.eup %1674 }
 0x3d3   :  { %v424_v42 = vadd.f32 1.0, %v1675_v41 }
 0x3d5   :  { %1676 = vrcp.f32 %v424_v42 }
 0x3e2   :  { %v1677_v43 = vpop.eup %1676 }
 0x3e3   :  { %v428_v46 = vmul.f32 %v1677_v43, %v298_v30  ;;  %v762_v30 = vld [vmem:[#allocation2 + $0x8] sm:$0x3] }
 0x443   :  { %v431_v44 = vpop.permute.xlu1 %430 }
 0x444   :  { %v433_v45 = vmul.f32 %v1677_v43, %v431_v44 }
 0x446   :  { %435 = vrot.lane.b32.xlu0 %v433_v45, %s1908_s5 }
 0x4b8   :  { %v436_v47 = vpop.permute.xlu0 %435 }
 0x4b9   :  { %v438_v48 = vadd.f32 %v436_v47, %v428_v46 }
 0x4bb   :  { %1678 = vtanh.f32 %v438_v48 }
 0x4c8   :  { %v1679_v49 = vpop.eup %1678 }
 0x4c9   :  { %441 = vrot.lane.b32.xlu1 %v1679_v49, %s1907_s17  ;;  %v901_v49 = vld [vmem:[#allocation2 + $0xa] sm:$0x3] }
 0x53b   :  { %v442_v50 = vpop.permute.xlu1 %441 }
 0x53c   :  { %v2067_v51 = vmul.f32 %v1677_v43, %v442_v50 }
 0x53e   :  { %485 = vrot.lane.b32.xlu0 %v2067_v51, %s1908_s5 }
 0x5b0   :  { %v486_v52 = vpop.permute.xlu0 %485 }
 0x5b1   :  { %1580 = vmatmul.mubr.msk.f32.vlgmr.msra.gmra.mxu1 %vm202_vm2, %v486_v52 }
 0x5b2   :  { %1594 = vmatpush3.msra.mxu1 %v2000_v4  ;;  %1601 = vmatprep.mubr.msk.f32.mxu1 %vm1906_vm0, %v1905_v0 }
 0x5b3   :  { %1595 = vmatprep.subr.mxu1 %v1905_v0 }
 0x5b4   :  { %1596 = vmatpush3.msra.mxu1 %v2002_v5 }
 0x5b5   :  { %1597 = vmatprep.subr.mxu1 %v1905_v0 }
 0x5b6   :  { %1598 = vmatpush3.msra.mxu1 %v2006_v7 }
 0x5b7   :  { %1599 = vmatprep.subr.mxu1 %v1905_v0 }
 0x5b8   :  { %1600 = vmatpush3.msra.mxu1 %v2011_v8 }
 0x5b9   :  { %1615 = vmatprep.subr.mxu1 %v1905_v0 }
 0x671   :  { %v555_v54 = vpop.f32.mrf.mxu1 }
 0x672   :  { %v559_v55 = vadd.f32 %v555_v54, %v484_v53 }
 0x673   :  { %v1581_v56 = vpop.f32.mrf.mxu1 }
 0x674   :  { %1680 = vtanh.f32 %v559_v55  ;;  %v1478_v58 = vmul.f32 -1.442695, %v559_v55 }
 0x676   :  { %1682 = vpow2.f32 %v1478_v58 }
 0x681   :  { %v1681_v57 = vpop.eup %1680 }
 0x682   :  { %569 = vrot.lane.b32.xlu1 %v1681_v57, %s1907_s17 }
 0x683   :  { %v1683_v59 = vpop.eup %1682 }
 0x684   :  { %v563_v60 = vadd.f32 1.0, %v1683_v59 }
 0x686   :  { %1684 = vrcp.f32 %v563_v60 }
 0x693   :  { %v1685_v61 = vpop.eup %1684 }
 0x694   :  { %v567_v1 = vmul.f32 %v1685_v61, %v438_v48 }
 0x6f4   :  { %v570_v62 = vpop.permute.xlu1 %569 }
 0x6f5   :  { %v572_v63 = vmul.f32 %v1685_v61, %v570_v62 }
 0x6f7   :  { %574 = vrot.lane.b32.xlu0 %v572_v63, %s1908_s5  ;;  %v1040_v63 = vld [vmem:[#allocation2 + $0xc] sm:$0x3] }
 0x769   :  { %v575_v2 = vpop.permute.xlu0 %574 }
 0x76a   :  { %v577_v3 = vadd.f32 %v575_v2, %v567_v1 }
 0x76c   :  { %1686 = vtanh.f32 %v577_v3 }
 0x779   :  { %v1687_v6 = vpop.eup %1686 }
 0x77a   :  { %580 = vrot.lane.b32.xlu1 %v1687_v6, %s1907_s17 }
 0x7ec   :  { %v581_v9 = vpop.permute.xlu1 %580 }
 0x7ed   :  { %v2085_v10 = vmul.f32 %v1685_v61, %v581_v9 }
 0x7ef   :  { %624 = vrot.lane.b32.xlu0 %v2085_v10, %s1908_s5 }
 0x861   :  { %v625_v11 = vpop.permute.xlu0 %624 }
 0x862   :  { %1591 = vmatmul.mubr.msk.f32.vlgmr.msra.gmra.mxu0 %vm202_vm2, %v625_v11 }
 0x863   :  { %1605 = vmatpush3.msra.mxu0 %v2000_v4  ;;  %1612 = vmatprep.mubr.msk.f32.mxu0 %vm1906_vm0, %v1905_v0 }
 0x864   :  { %1606 = vmatprep.subr.mxu0 %v1905_v0 }
 0x865   :  { %1607 = vmatpush3.msra.mxu0 %v2002_v5 }
 0x866   :  { %1608 = vmatprep.subr.mxu0 %v1905_v0 }
 0x867   :  { %1609 = vmatpush3.msra.mxu0 %v2006_v7 }
 0x868   :  { %1610 = vmatprep.subr.mxu0 %v1905_v0 }
 0x869   :  { %1611 = vmatpush3.msra.mxu0 %v2011_v8 }
 0x86a   :  { %1626 = vmatprep.subr.mxu0 %v1905_v0 }
 0x922   :  { %v694_v13 = vpop.f32.mrf.mxu0 }
 0x923   :  { %v698_v14 = vadd.f32 %v694_v13, %v623_v12 }
 0x924   :  { %v1592_v15 = vpop.f32.mrf.mxu0 }
 0x925   :  { %1688 = vtanh.f32 %v698_v14  ;;  %v1480_v17 = vmul.f32 -1.442695, %v698_v14 }
 0x927   :  { %1690 = vpow2.f32 %v1480_v17 }
 0x932   :  { %v1689_v16 = vpop.eup %1688 }
 0x933   :  { %708 = vrot.lane.b32.xlu1 %v1689_v16, %s1907_s17 }
 0x934   :  { %v1691_v18 = vpop.eup %1690 }
 0x935   :  { %v702_v19 = vadd.f32 1.0, %v1691_v18 }
 0x937   :  { %1692 = vrcp.f32 %v702_v19 }
 0x944   :  { %v1693_v20 = vpop.eup %1692 }
 0x945   :  { %v706_v23 = vmul.f32 %v1693_v20, %v577_v3 }
 0x9a5   :  { %v709_v21 = vpop.permute.xlu1 %708 }
 0x9a6   :  { %v711_v22 = vmul.f32 %v1693_v20, %v709_v21 }
 0x9a8   :  { %713 = vrot.lane.b32.xlu0 %v711_v22, %s1908_s5 }
 0xa1a   :  { %v714_v24 = vpop.permute.xlu0 %713 }
 0xa1b   :  { %v716_v25 = vadd.f32 %v714_v24, %v706_v23  ;;  %v1179_v23 = vld [vmem:[#allocation2 + $0xe] sm:$0x3] }
 0xa1d   :  { %1694 = vtanh.f32 %v716_v25 }
 0xa2a   :  { %v1695_v26 = vpop.eup %1694 }
 0xa2b   :  { %719 = vrot.lane.b32.xlu1 %v1695_v26, %s1907_s17 }
 0xa9d   :  { %v720_v27 = vpop.permute.xlu1 %719 }
 0xa9e   :  { %v2103_v28 = vmul.f32 %v1693_v20, %v720_v27 }
 0xaa0   :  { %763 = vrot.lane.b32.xlu0 %v2103_v28, %s1908_s5 }
 0xb12   :  { %v764_v29 = vpop.permute.xlu0 %763 }
 0xb13   :  { %1602 = vmatmul.mubr.msk.f32.vlgmr.msra.gmra.mxu1 %vm202_vm2, %v764_v29 }
 0xb14   :  { %1616 = vmatpush3.msra.mxu1 %v2000_v4  ;;  %1623 = vmatprep.mubr.msk.f32.mxu1 %vm1906_vm0, %v1905_v0 }
 0xb15   :  { %1617 = vmatprep.subr.mxu1 %v1905_v0 }
 0xb16   :  { %1618 = vmatpush3.msra.mxu1 %v2002_v5 }
 0xb17   :  { %1619 = vmatprep.subr.mxu1 %v1905_v0 }
 0xb18   :  { %1620 = vmatpush3.msra.mxu1 %v2006_v7 }
 0xb19   :  { %1621 = vmatprep.subr.mxu1 %v1905_v0 }
 0xb1a   :  { %1622 = vmatpush3.msra.mxu1 %v2011_v8 }
 0xbd3   :  { %v833_v31 = vpop.f32.mrf.mxu1 }
 0xbd4   :  { %v837_v32 = vadd.f32 %v833_v31, %v762_v30 }
 0xbd5   :  { %v1603_v34 = vpop.f32.mrf.mxu1 }
 0xbd6   :  { %1696 = vtanh.f32 %v837_v32  ;;  %v1482_v36 = vmul.f32 -1.442695, %v837_v32  ;;  %v1909_v32 = vmov 1966171168  }
 0xbd7   :  { %v307_v34 = vunpack.c.l.s4 %v1909_v32 }
 0xbd8   :  { %1698 = vpow2.f32 %v1482_v36 }
 0xbd9   :  { %v308_v36 = vunpack.c.0.s8 %v307_v34  ;;  %v1333_v34 = vld [vmem:[#allocation12 + $0x18] sm:$0xff] }
 0xbda   :  { %1637 = vmatprep.subr.mxu1 %v1333_v34 }
 0xbe3   :  { %v1697_v35 = vpop.eup %1696 }
 0xbe4   :  { %847 = vrot.lane.b32.xlu1 %v1697_v35, %s1907_s17  ;;  %v309_v35 = vlaneseq }
 0xbe5   :  { %v1699_v37 = vpop.eup %1698 }
 0xbe6   :  { %v841_v38 = vadd.f32 1.0, %v1699_v37  ;;  %v310_v37 = vshrl.u32 %v309_v35, 7  ;;  %v1332_v35 = vld [vmem:[#allocation12 + $0x10] sm:$0xff] }
 0xbe8   :  { %1700 = vrcp.f32 %v841_v38  ;;  %v2151_v38 = vsub.s32 %v308_v36, %v310_v37 }
 0xbf5   :  { %v1701_v39 = vpop.eup %1700 }
 0xbf6   :  { %v845_v42 = vmul.f32 %v1701_v39, %v716_v25 }
 0xc56   :  { %v848_v40 = vpop.permute.xlu1 %847 }
 0xc57   :  { %v850_v41 = vmul.f32 %v1701_v39, %v848_v40 }
 0xc59   :  { %852 = vrot.lane.b32.xlu0 %v850_v41, %s1908_s5 }
 0xccb   :  { %v853_v43 = vpop.permute.xlu0 %852 }
 0xccc   :  { %v855_v44 = vadd.f32 %v853_v43, %v845_v42  ;;  %v591_v43 = vrot.slane %v2085_v10, %v2151_v38 }
 0xcce   :  { %1702 = vtanh.f32 %v855_v44 }
 0xcdb   :  { %v1703_v45 = vpop.eup %1702 }
 0xcdc   :  { %858 = vrot.lane.b32.xlu1 %v1703_v45, %s1907_s17  ;;  %v2161_v45 = vsub.s32 0, %v310_v37 }
 0xd4e   :  { %v859_v46 = vpop.permute.xlu1 %858 }
 0xd4f   :  { %v2120_v47 = vmul.f32 %v1701_v39, %v859_v46  ;;  %v312_v39 = vrot.slane %v2049_v33, %v2151_v38  ;;  %v599_v46 = vrot.slane %v591_v43, %v2151_v38 }
 0xd51   :  { %902 = vrot.lane.b32.xlu0 %v2120_v47, %s1908_s5  ;;  %v320_v42 = vrot.slane %v312_v39, %v2151_v38  ;;  %v610_v10 = vrot.slane %v599_v46, %v2161_v45 }
 0xd53   :  { %v331_v33 = vrot.slane %v320_v42, %v2161_v45  ;;  %v1330_v42 = vld [vmem:[#allocation12] sm:$0xff] }
 0xdc3   :  { %v903_v48 = vpop.permute.xlu0 %902 }
 0xdc4   :  { %1613 = vmatmul.mubr.msk.f32.vlgmr.msra.gmra.mxu0 %vm202_vm2, %v903_v48  ;;  %v869_v48 = vrot.slane %v2120_v47, %v2151_v38  ;;  %v592_v47 = vcombine.high %v591_v43, %v591_v43 }
 0xdc5   :  { %1627 = vmatpush3.msra.mxu0 %v2000_v4  ;;  %1634 = vmatprep.mubr.msk.f32.mxu0 %vm1906_vm0, %v1905_v0 }
 0xdc6   :  { %1628 = vmatprep.subr.mxu0 %v1905_v0 }
 0xdc7   :  { %1629 = vmatpush3.msra.mxu0 %v2002_v5 }
 0xdc8   :  { %1630 = vmatprep.subr.mxu0 %v1905_v0 }
 0xdc9   :  { %1631 = vmatpush3.msra.mxu0 %v2006_v7 }
 0xdca   :  { %1632 = vmatprep.subr.mxu0 %v1905_v0 }
 0xdcb   :  { %1633 = vmatpush3.msra.mxu0 %v2011_v8 }
 0xe84   :  { %v972_v50 = vpop.f32.mrf.mxu0 }
 0xe85   :  { %v976_v52 = vadd.f32 %v972_v50, %v901_v49  ;;  %v877_v49 = vrot.slane %v869_v48, %v2151_v38 }
 0xe86   :  { %v1614_v53 = vpop.f32.mrf.mxu0 }
 0xe87   :  { %1704 = vtanh.f32 %v976_v52  ;;  %v1484_v54 = vmul.f32 -1.442695, %v976_v52  ;;  %v313_v52 = vcombine.high %v312_v39, %v312_v39 }
 0xe89   :  { %1706 = vpow2.f32 %v1484_v54 }
 0xe94   :  { %v1705_v4 = vpop.eup %1704 }
 0xe95   :  { %986 = vrot.lane.b32.xlu1 %v1705_v4, %s1907_s17  ;;  %v888_v4 = vrot.slane %v877_v49, %v2161_v45 }
 0xe96   :  { %v1707_v55 = vpop.eup %1706 }
 0xe97   :  { %v980_v5 = vadd.f32 1.0, %v1707_v55  ;;  %v327_v55 = vrot.slane %v313_v52, %v2151_v38 }
 0xe99   :  { %1708 = vrcp.f32 %v980_v5  ;;  %v870_v5 = vcombine.high %v869_v48, %v869_v48 }
 0xea6   :  { %v1709_v56 = vpop.eup %1708 }
 0xea7   :  { %v984_v0 = vmul.f32 %v1709_v56, %v855_v44 }
 0xf07   :  { %v987_v57 = vpop.permute.xlu1 %986 }
 0xf08   :  { %v989_v7 = vmul.f32 %v1709_v56, %v987_v57  ;;  %v606_v57 = vrot.slane %v592_v47, %v2151_v38 }
 0xf0a   :  { %991 = vrot.lane.b32.xlu0 %v989_v7, %s1908_s5 }
 0xf7c   :  { %v992_v8 = vpop.permute.xlu0 %991 }
 0xf7d   :  { %v994_v58 = vadd.f32 %v992_v8, %v984_v0  ;;  %v614_v0 = vrot.slane %v606_v57, %v2161_v45  ;;  %v884_v8 = vrot.slane %v870_v5, %v2151_v38 }
 0xf7f   :  { %1710 = vtanh.f32 %v994_v58 }
 0xf8c   :  { %v1711_v59 = vpop.eup %1710 }
 0xf8d   :  { %997 = vrot.lane.b32.xlu1 %v1711_v59, %s1907_s17 }
 0xfff   :  { %v998_v60 = vpop.permute.xlu1 %997 }
0x1000   :  { %v2137_v61 = vmul.f32 %v1709_v56, %v998_v60  ;;  %v335_v56 = vrot.slane %v327_v55, %v2161_v45 }
0x1002   :  { %1041 = vrot.lane.b32.xlu0 %v2137_v61, %s1908_s5 }
0x1074   :  { %v1042_v62 = vpop.permute.xlu0 %1041 }
0x1075   :  { %1624 = vmatmul.mubr.msk.f32.vlgmr.msra.gmra.mxu1 %vm202_vm2, %v1042_v62 }
0x1076   :  { %1638 = vmatpush3.msra.mxu1 %v1333_v34 }
0x1077   :  { %1639 = vmatprep.subr.mxu1 %v1332_v35 }
0x1078   :  { %1640 = vmatpush3.msra.mxu1 %v1332_v35 }
0x1135   :  { %v1111_v1 = vpop.f32.mrf.mxu1 }
0x1136   :  { %v1115_v2 = vadd.f32 %v1111_v1, %v1040_v63 }
0x1137   :  { %v1625_v3 = vpop.f32.mrf.mxu1 }
0x1138   :  { %1712 = vtanh.f32 %v1115_v2  ;;  %v1486_v9 = vmul.f32 -1.442695, %v1115_v2 }
0x113a   :  { %1714 = vpow2.f32 %v1486_v9 }
0x1145   :  { %v1713_v6 = vpop.eup %1712 }
0x1146   :  { %1125 = vrot.lane.b32.xlu1 %v1713_v6, %s1907_s17  ;;  %v452_v6 = vrot.slane %v2067_v51, %v2151_v38 }
0x1147   :  { %v1715_v11 = vpop.eup %1714 }
0x1148   :  { %v1119_v12 = vadd.f32 1.0, %v1715_v11  ;;  %v460_v11 = vrot.slane %v452_v6, %v2151_v38 }
0x114a   :  { %1716 = vrcp.f32 %v1119_v12  ;;  %v730_v12 = vrot.slane %v2103_v28, %v2151_v38  ;;  %v471_v51 = vrot.slane %v460_v11, %v2161_v45 }
0x1157   :  { %v1717_v13 = vpop.eup %1716 }
0x1158   :  { %v1123_v16 = vmul.f32 %v1717_v13, %v994_v58  ;;  %v892_v58 = vrot.slane %v884_v8, %v2161_v45 }
0x11b8   :  { %v1126_v14 = vpop.permute.xlu1 %1125 }
0x11b9   :  { %v1128_v15 = vmul.f32 %v1717_v13, %v1126_v14 }
0x11bb   :  { %1130 = vrot.lane.b32.xlu0 %v1128_v15, %s1908_s5  ;;  %v738_v15 = vrot.slane %v730_v12, %v2151_v38 }
0x122d   :  { %v1131_v17 = vpop.permute.xlu0 %1130 }
0x122e   :  { %v2144_v18 = vadd.f32 %v1131_v17, %v1123_v16  ;;  %v1008_v16 = vrot.slane %v2137_v61, %v2151_v38 }
0x1230   :  { %1718 = vtanh.f32 %v2144_v18  ;;  %v1016_v28 = vrot.slane %v1008_v16, %v2151_v38 }
0x1232   :  { %v1027_v61 = vrot.slane %v1016_v28, %v2161_v45 }
0x123d   :  { %v1719_v19 = vpop.eup %1718 }
0x123e   :  { %1136 = vrot.lane.b32.xlu1 %v1719_v19, %s1907_s17  ;;  %v749_v19 = vrot.slane %v738_v15, %v2161_v45 }
0x12b0   :  { %v1137_v20 = vpop.permute.xlu1 %1136 }
0x12b1   :  { %v1139_v21 = vmul.f32 %v1717_v13, %v1137_v20 }
0x12b3   :  { %1180 = vrot.lane.b32.xlu0 %v1139_v21, %s1908_s5  ;;  %v1147_v50 = vrot.slane %v1139_v21, %v2151_v38  ;;  %v731_v21 = vcombine.high %v730_v12, %v730_v12 }
0x12b5   :  { %v1155_v53 = vrot.slane %v1147_v50, %v2151_v38  ;;  %v1148_v7 = vcombine.high %v1147_v50, %v1147_v50 }
0x12b7   :  { %v1166_v54 = vrot.slane %v1155_v53, %v2161_v45  ;;  %v1162_v59 = vrot.slane %v1148_v7, %v2151_v38 }
0x12b9   :  { %v1170_v60 = vrot.slane %v1162_v59, %v2161_v45 }
0x1325   :  { %v1181_v22 = vpop.permute.xlu0 %1180 }
0x1326   :  { %1635 = vmatmul.mubr.msk.f32.vlgmr.msra.gmra.mxu0 %vm202_vm2, %v1181_v22 }
0x13e6   :  { %v1250_v24 = vpop.f32.mrf.mxu0 }
0x13e7   :  { %v1254_v25 = vadd.f32 %v1250_v24, %v1179_v23  ;;  %v1009_v24 = vcombine.high %v1008_v16, %v1008_v16 }
0x13e8   :  { %v1636_v26 = vpop.f32.mrf.mxu0 }
0x13e9   :  { %1720 = vtanh.f32 %v1254_v25  ;;  %v1488_v29 = vmul.f32 -1.442695, %v1254_v25  ;;  %v745_v26 = vrot.slane %v731_v21, %v2151_v38 }
0x13eb   :  { %1722 = vpow2.f32 %v1488_v29  ;;  %v753_v29 = vrot.slane %v745_v26, %v2161_v45 }
0x13f6   :  { %v1721_v27 = vpop.eup %1720 }
0x13f7   :  { %1264 = vrot.lane.b32.xlu1 %v1721_v27, %s1907_s17 }
0x13f8   :  { %v1723_v30 = vpop.eup %1722 }
0x13f9   :  { %v1258_v31 = vadd.f32 1.0, %v1723_v30  ;;  %v1023_v30 = vrot.slane %v1009_v24, %v2151_v38 }
0x13fb   :  { %1724 = vrcp.f32 %v1258_v31  ;;  %v1031_v31 = vrot.slane %v1023_v30, %v2161_v45 }
0x1408   :  { %v2155_v40 = vpop.eup %1724 }
0x1409   :  { %v1262_v62 = vmul.f32 %v2155_v40, %v2144_v18  ;;  %v453_v18 = vcombine.high %v452_v6, %v452_v6 }
0x140b   :  { %v467_v22 = vrot.slane %v453_v18, %v2151_v38 }
0x140d   :  { %v475_v25 = vrot.slane %v467_v22, %v2161_v45 }
0x1469   :  { %v1265_v41 = vpop.permute.xlu1 %1264 }
0x146a   :  { %v1267_v44 = vmul.f32 %v2155_v40, %v1265_v41  ;;  %v1331_v41 = vld [vmem:[#allocation12 + $0x8] sm:$0xff] }
0x146b   :  { %1641 = vmatprep.subr.mxu1 %v1331_v41 }
0x146c   :  { %1269 = vrot.lane.b32.xlu0 %v1267_v44, %s1908_s5  ;;  %1642 = vmatpush3.msra.mxu1 %v1331_v41 }
0x146d   :  { %1643 = vmatprep.subr.mxu1 %v1330_v42 }
0x146e   :  { %1644 = vmatpush3.msra.mxu1 %v1330_v42 }
0x1470   :  { %336 = vrot.lane.b32.xlu0 %v331_v33, %s1908_s5 }
0x1474   :  { %615 = vrot.lane.b32.xlu0 %v610_v10, %s1908_s5 }
0x1478   :  { %893 = vrot.lane.b32.xlu0 %v888_v4, %s1908_s5 }
0x147c   :  { %1171 = vrot.lane.b32.xlu0 %v1166_v54, %s1908_s5 }
0x1480   :  { %338 = vrot.lane.b32.xlu0 %v335_v56, %s1908_s5 }
0x1484   :  { %617 = vrot.lane.b32.xlu0 %v614_v0, %s1908_s5 }
0x1488   :  { %895 = vrot.lane.b32.xlu0 %v892_v58, %s1908_s5 }
0x148c   :  { %1173 = vrot.lane.b32.xlu0 %v1170_v60, %s1908_s5 }
0x14de   :  { %v1270_v63 = vpop.permute.xlu0 %1269 }
0x14df   :  { %v2192_v1 = vadd.f32 %v1270_v63, %v1262_v62 }
0x14e1   :  { %1726 = vtanh.f32 %v2192_v1 }
0x14e2   :  { %v337_v2 = vpop.permute.xlu0 %336 }
0x14e3   :  { %343 = vst.msk [vmem:[#allocation3] sm:$0x1] %vm342_vm3, %v337_v2 }
0x14e6   :  { %v616_v3 = vpop.permute.xlu0 %615 }
0x14e7   :  { %621 = vst.msk [vmem:[#allocation3 + $0x2] sm:$0x1] %vm342_vm3, %v616_v3 }
0x14ea   :  { %v894_v9 = vpop.permute.xlu0 %893 }
0x14eb   :  { %899 = vst.msk [vmem:[#allocation3 + $0x4] sm:$0x1] %vm342_vm3, %v894_v9 }
0x14ee   :  { %v1727_v13 = vpop.eup %1726  ;;  %v1172_v14 = vpop.permute.xlu0 %1171 }
0x14ef   :  { %1177 = vst.msk [vmem:[#allocation3 + $0x6] sm:$0x1] %vm342_vm3, %v1172_v14  ;;  %1275 = vrot.lane.b32.xlu1 %v1727_v13, %s1907_s17 }
0x14f2   :  { %v339_v17 = vpop.permute.xlu0 %338 }
0x14f3   :  { %344 = vst.msk [vmem:[#allocation3 + $0x8] sm:$0x1] %vm342_vm3, %v339_v17  ;;  %476 = vrot.lane.b32.xlu1 %v471_v51, %s1908_s5 }
0x14f6   :  { %v618_v20 = vpop.permute.xlu0 %617 }
0x14f7   :  { %622 = vst.msk [vmem:[#allocation3 + $0xa] sm:$0x1] %vm342_vm3, %v618_v20  ;;  %754 = vrot.lane.b32.xlu1 %v749_v19, %s1908_s5 }
0x14fa   :  { %v896_v23 = vpop.permute.xlu0 %895 }
0x14fb   :  { %900 = vst.msk [vmem:[#allocation3 + $0xc] sm:$0x1] %vm342_vm3, %v896_v23  ;;  %1032 = vrot.lane.b32.xlu1 %v1027_v61, %s1908_s5 }
0x14fe   :  { %v1174_v27 = vpop.permute.xlu0 %1173 }
0x14ff   :  { %1178 = vst.msk [vmem:[#allocation3 + $0xe] sm:$0x1] %vm342_vm3, %v1174_v27  ;;  %478 = vrot.lane.b32.xlu1 %v475_v25, %s1908_s5 }
0x1503   :  { %756 = vrot.lane.b32.xlu1 %v753_v29, %s1908_s5 }
0x1507   :  { %1034 = vrot.lane.b32.xlu1 %v1031_v31, %s1908_s5 }
0x1561   :  { %v1276_v32 = vpop.permute.xlu1 %1275 }
0x1562   :  { %v1278_v36 = vmul.f32 %v2155_v40, %v1276_v32 }
0x1564   :  { %v1286_v37 = vrot.slane %v1278_v36, %v2151_v38  ;;  %1318 = vrot.lane.b32.xlu0 %v1278_v36, %s1908_s5 }
0x1565   :  { %v477_v39 = vpop.permute.xlu1 %476 }
0x1566   :  { %v1287_v43 = vcombine.high %v1286_v37, %v1286_v37  ;;  %v1294_v44 = vrot.slane %v1286_v37, %v2151_v38  ;;  %482 = vst.msk [vmem:[#allocation3 + $0x1] sm:$0x1] %vm342_vm3, %v477_v39 }
0x1568   :  { %v1305_v40 = vrot.slane %v1294_v44, %v2161_v45  ;;  %v1301_v46 = vrot.slane %v1287_v43, %v2151_v38 }
0x1569   :  { %v755_v48 = vpop.permute.xlu1 %754 }
0x156a   :  { %760 = vst.msk [vmem:[#allocation3 + $0x3] sm:$0x1] %vm342_vm3, %v755_v48  ;;  %1310 = vrot.lane.b32.xlu1 %v1305_v40, %s1908_s5  ;;  %v1309_v33 = vrot.slane %v1301_v46, %v2161_v45 }
0x156d   :  { %v1033_v49 = vpop.permute.xlu1 %1032 }
0x156e   :  { %1038 = vst.msk [vmem:[#allocation3 + $0x5] sm:$0x1] %vm342_vm3, %v1033_v49  ;;  %1312 = vrot.lane.b32.xlu1 %v1309_v33, %s1908_s5 }
0x1571   :  { %v479_v50 = vpop.permute.xlu1 %478 }
0x1572   :  { %483 = vst.msk [vmem:[#allocation3 + $0x9] sm:$0x1] %vm342_vm3, %v479_v50  ;;  %1324 = vrot.lane.b32.xlu1 %v2192_v1, %s1910_s2 }
0x1575   :  { %v757_v38 = vpop.permute.xlu1 %756 }
0x1576   :  { %761 = vst.msk [vmem:[#allocation3 + $0xb] sm:$0x1] %vm342_vm3, %v757_v38 }
0x1579   :  { %v1035_v10 = vpop.permute.xlu1 %1034 }
0x157a   :  { %1039 = vst.msk [vmem:[#allocation3 + $0xd] sm:$0x1] %vm342_vm3, %v1035_v10 }
0x15d6   :  { %v1319_v52 = vpop.permute.xlu0 %1318 }
0x15d7   :  { %1322 = vst.msk [vmem:[#allocation14] sm:$0x3] %vm1321_vm4, %v1319_v52 }
0x15dc   :  { %v1311_v45 = vpop.permute.xlu1 %1310 }
0x15dd   :  { %1316 = vst.msk [vmem:[#allocation3 + $0x7] sm:$0x1] %vm342_vm3, %v1311_v45 }
0x15e0   :  { %v1313_v53 = vpop.permute.xlu1 %1312 }
0x15e1   :  { %1317 = vst.msk [vmem:[#allocation3 + $0xf] sm:$0x1] %vm342_vm3, %v1313_v53 }
0x15e4   :  { %v1325_v4 = vpop.permute.xlu1 %1324  ;;  %v1328_v47 = vld [vmem:[#allocation3] sm:$0xff] }
0x15e5   :  { %1327 = vst.msk [vmem:[#allocation16] sm:$0x3] %vm1321_vm4, %v1325_v4  ;;  %1645 = vmatprep.mubr.msk.f32.mxu1 %vm202_vm2, %v1328_v47 }
0x15e8   :  { %v1329_v54 = vld [vmem:[#allocation3 + $0x8] sm:$0xff] }
0x15e9   :  { %1646 = vmatmul.mubr.msk.f32.vlgmr.msra.gmra.mxu1 %vm202_vm2, %v1329_v54 }
0x15ea   :  { %1839 = shalt.err (!%p1836_p1)
}
0x15eb   :  { %1445 = dma.vmem_to_hbm [thread:$0]  %s1443_s21, 32, %s2274_s9, [#allocation15]  }
0x15ec   :  { %s1912_s1 = smov [#allocation16]  }
0x15ed   :  { %s1452_s27 = sshll.u32 %s1912_s1, 4  ;;  %s1453_s27 = int_to_ptr.vmem [resolvable:$true] %s1452_s27 }
0x15ee   :  { %s1848_s28 = scalar_lea.vmem %s1453_s27, 32  ;;  %p1853_p3 = scmp.lt.s32.totalorder %s1453_s27, %s1453_s27 }
0x15ef   :  { %p1849_p2 = scmp.ne.s32.totalorder %s1453_s27, %s1848_s28  ;;  %p1854_p4 = scmp.lt.s32.totalorder %s1848_s28, %s1848_s28 }
0x15f1   :  { %p1855_p5 = por %p1854_p4, %p1853_p3 }
0x15f3   :  { %p1856_p6 = pnand %p1855_p5, %p1849_p2 }
0x15f5   :  { %1859 = shalt.err (!%p1856_p6)
}
0x15f6   :  { %1455 = dma.vmem_to_hbm [thread:$0]  %s1453_s27, 32, %s2275_s10, [#allocation15]   ;;  %v1489_v55 = vld [vmem:[%s2272_s7] ss:$0 sm:$0xff] }
0x15f7   :  { %s1913_s9 = smov [#allocation13]  }
0x15f8   :  { %s1429_s12 = sshll.u32 %s1913_s9, 4  ;;  %s1430_s12 = int_to_ptr.vmem [resolvable:$true] %s1429_s12 }
0x15f9   :  { %s1868_s13 = scalar_lea.vmem %s1430_s12, 256  ;;  %p1873_p8 = scmp.lt.s32.totalorder %s1430_s12, %s1430_s12 }
0x15fa   :  { %p1869_p7 = scmp.ne.s32.totalorder %s1430_s12, %s1868_s13  ;;  %p1874_p9 = scmp.lt.s32.totalorder %s1868_s13, %s1868_s13 }
0x15fc   :  { %p1875_p10 = por %p1874_p9, %p1873_p8 }
0x15fe   :  { %p1876_p11 = pnand %p1875_p10, %p1869_p7 }
0x16a9   :  { %v1647_v5 = vpop.f32.mrf.mxu1 }
0x16aa   :  { %v1419_v56 = vadd.f32 %v1647_v5, %v1489_v55 }
0x16ab   :  { %v1413_v57 = vpop.f32.mrf.mxu1 }
0x16ac   :  { %1423 = vst.msk [vmem:[#allocation13 + $0x8] sm:$0xff] %vm202_vm2, %v1419_v56  ;;  %v1414_v7 = vadd.f32 %v1489_v55, %v1413_v57 }
0x16ae   :  { %1422 = vst.msk [vmem:[#allocation13] sm:$0xff] %vm202_vm2, %v1414_v7 }
0x16af   :  { %1879 = shalt.err (!%p1876_p11)
}
0x16b0   :  { %1435 = dma.vmem_to_hbm [thread:$0]  %s1430_s12, 256, %s2273_s8, [#allocation6], %s1901_s23, %s1901_s23, %s1902_s24  }
0x16b1   :  { %1894 = dma.done.wait [#allocation6], 256  }
0x16b2   :  { %1895 = vsyncadd [#allocation6], 4294967040 }
0x16b3   :  { %1896 = dma.done.wait [#allocation15], 64  }
0x16b4   :  { %1897 = vsyncadd [#allocation15], 4294967232 }
0x16b5   :  { %1465 = vsyncpa [#allocation5], 1 }
0x16b6   :  { %1466 = vsyncpa [#allocation8], 1 }
0x16b7   :  { %1467 = vsyncpa [#allocation11], 1 }
0x16b8   :  { %1468 = vsyncpa [#allocation6], 1 }
0x16b9   :  { %1469 = vsyncpa [#allocation15], 1 }

</bundles_post_ra>
